<compile_context>
chip_gen: v7x
topology: tpu7x:2x2x1
jax: 0.10.0
libtpu: 0.0.40
codegen_flags: <defaults>
</compile_context>

<pallas_src>
import functools

import jax
import jax.numpy as jnp
from jax.experimental import pallas as pl
from jax.experimental.pallas import tpu as pltpu


def _fused_regression_kernel(*refs, n_layers, out_len, halo):
    # refs layout: x, (w_0, b_0), ..., (w_{n-1}, b_{n-1}), out,
    #              buf_in, buf_a, buf_b
    x_ref = refs[0]
    w_refs = [refs[1 + 2 * i] for i in range(n_layers)]
    b_refs = [refs[2 + 2 * i] for i in range(n_layers)]
    o_ref = refs[1 + 2 * n_layers]
    buf_in, buf_a, buf_b = refs[2 + 2 * n_layers:]

    L = out_len

    # Zero the scratch buffers once per batch element: this provides the zero
    # halo rows of every kernel_size=3 / padding=1 conv for free (no jnp.pad,
    # no extra HBM copies of the activation).
    buf_in[...] = jnp.zeros_like(buf_in)
    buf_a[...] = jnp.zeros_like(buf_a)
    buf_b[...] = jnp.zeros_like(buf_b)

    # Stage the input into the padded scratch (body rows at an aligned offset).
    buf_in[pl.ds(halo, L), :] = x_ref[0]

    cur = buf_in
    pingpong = (buf_a, buf_b)
    for i in range(n_layers):
        c_out = w_refs[i].shape[-1]
        acc = jnp.zeros((L, c_out), jnp.float32)
        # 3 conv taps -> 3 shifted MXU matmuls, bf16 operands, f32 accumulate.
        for k in range(3):
            xs = cur[pl.ds(halo - 1 + k, L), :].astype(jnp.bfloat16)
            acc = acc + jnp.dot(xs, w_refs[i][k],
                                preferred_element_type=jnp.float32)
        acc = acc + b_refs[i][...]          # (1, C_out) f32 bias, broadcast
        if i < n_layers - 1:
            acc = jnp.maximum(acc, 0.0)     # ReLU in f32 (v5e-friendly)
            dst = pingpong[i % 2]
            dst[pl.ds(halo, L), :] = acc    # write body; halo rows stay zero
            cur = dst
        else:
            o_ref[0] = acc.astype(o_ref.dtype)   # lane-dense (padded) output


def regression_model_forward(x_ncw, params):
    """x_ncw: (B, num_features_in, L) PyTorch NCW layout. params: [(w, b)]."""
    B, C_in, L = x_ncw.shape
    n_layers = len(params)
    feat = params[0][0].shape[-1]             # feature_size
    a_out = params[-1][0].shape[-1]           # num_anchors * 1
    for w, _ in params[1:-1]:
        assert w.shape[-1] == feat

    # Pad the final layer's output channels to a lane-dense width (>=128).
    c_out_pad = max(128, ((a_out + 127) // 128) * 128)

    x = jnp.transpose(x_ncw, (0, 2, 1)).astype(jnp.float32)   # (B, L, C_in)

    inputs = [x]
    in_specs = [pl.BlockSpec((1, L, C_in), lambda bi: (bi, 0, 0))]
    flops = 0
    bytes_accessed = x.size * 4
    for i, (w, b) in enumerate(params):
        if i == n_layers - 1 and a_out != c_out_pad:
            w = jnp.pad(w, ((0, 0), (0, 0), (0, c_out_pad - a_out)))
            b = jnp.pad(b, ((0, c_out_pad - a_out),))
        wk = w.astype(jnp.bfloat16)                  # bf16 weights in HBM/VMEM
        bk = b.reshape(1, -1).astype(jnp.float32)    # f32 bias
        inputs += [wk, bk]
        in_specs += [
            pl.BlockSpec(wk.shape, lambda bi: (0, 0, 0)),   # loaded once
            pl.BlockSpec(bk.shape, lambda bi: (0, 0)),
        ]
        flops += 2 * B * L * 3 * wk.shape[1] * wk.shape[2]
        bytes_accessed += wk.size * 2 + bk.size * 4
    bytes_accessed += B * L * c_out_pad * 4

    halo = 8  # aligned body offset; rows halo-1 and halo+L are the zero halo
    scratch_shapes = [
        pltpu.VMEM((L + 2 * halo, C_in), jnp.float32),   # padded input
        pltpu.VMEM((L + 2 * halo, feat), jnp.float32),   # ping
        pltpu.VMEM((L + 2 * halo, feat), jnp.float32),   # pong
    ]

    kernel = functools.partial(_fused_regression_kernel,
                               n_layers=n_layers, out_len=L, halo=halo)

    out = pl.pallas_call(
        kernel,
        out_shape=jax.ShapeDtypeStruct((B, L, c_out_pad), jnp.float32),
        grid_spec=pltpu.PrefetchScalarGridSpec(
            num_scalar_prefetch=0,
            grid=(B,),
            in_specs=in_specs,
            out_specs=pl.BlockSpec((1, L, c_out_pad), lambda bi: (bi, 0, 0)),
            scratch_shapes=scratch_shapes,
        ),
        compiler_params=pltpu.CompilerParams(
            dimension_semantics=("parallel",)),   # v7x: one batch per core
        cost_estimate=pl.CostEstimate(
            flops=flops, transcendentals=0, bytes_accessed=bytes_accessed),
    )(*inputs)

    out = out[:, :, :a_out]                       # drop lane padding
    # PyTorch: (B, A, L) -> permute(0,2,1) -> (B, L, A) -> view(B, L*A, 1).
    return out.reshape(B, L * a_out, 1)


def init_params(key, num_features_in, num_anchors=1, feature_size=256):
    """Deterministic init matching the PyTorch module's layer shapes (f32)."""
    dims = [
        (num_features_in, feature_size),   # conv1
        (feature_size, feature_size),      # conv2
        (feature_size, feature_size),      # conv3
        (feature_size, feature_size),      # conv4
        (feature_size, num_anchors * 1),   # output
    ]
    params = []
    for cin, cout in dims:
        key, k1, k2 = jax.random.split(key, 3)
        bound = 1.0 / (cin * 3) ** 0.5  # PyTorch default Conv1d init scale
        w = jax.random.uniform(k1, (3, cin, cout), jnp.float32, -bound, bound)
        b = jax.random.uniform(k2, (cout,), jnp.float32, -bound, bound)
        params.append((w, b))
    return params


def _reference_forward(x_ncw, params):
    """Pure-JAX f32 reference via lax.conv_general_dilated (NCW)."""
    out = x_ncw
    n_layers = len(params)
    for i, (w, b) in enumerate(params):
        w_oiw = jnp.transpose(w, (2, 1, 0))  # (C_out, C_in, 3)
        out = jax.lax.conv_general_dilated(
            out, w_oiw, window_strides=(1,), padding=[(1, 1)],
            dimension_numbers=("NCH", "OIH", "NCH"))
        out = out + b[None, :, None]
        if i < n_layers - 1:
            out = jnp.maximum(out, 0.0)
    out = jnp.transpose(out, (0, 2, 1))
    return out.reshape(out.shape[0], -1, 1)


if __name__ == "__main__":
    key = jax.random.PRNGKey(0)
    B, C_in, L = 2, 32, 16
    feature_size = 256   # module default
    num_anchors = 1

    kx, kp = jax.random.split(key)
    x = jax.random.normal(kx, (B, C_in, L), jnp.float32)
    params = init_params(kp, C_in, num_anchors=num_anchors,
                         feature_size=feature_size)

    out = regression_model_forward(x, params)
    jax.block_until_ready(out)
    assert out.shape == (B, L * num_anchors, 1), out.shape

    ref = _reference_forward(x, params)
    # bf16 MXU operands in the kernel vs f32 reference -> loose tolerance.
    err = float(jnp.max(jnp.abs(out - ref)))
    assert jnp.allclose(out, ref, atol=5e-2, rtol=5e-2), err

    print("KERNEL_OK")
</pallas_src>

<mosaic_0001>
module attributes {stable_mosaic.version = 11 : i64} {
  func.func @_fused_regression_kernel(%arg0: i32, %arg1: memref<1x16x32xf32, #tpu.memory_space<vmem>>, %arg2: memref<3x32x256xbf16, #tpu.memory_space<vmem>>, %arg3: memref<1x256xf32, #tpu.memory_space<vmem>>, %arg4: memref<3x256x256xbf16, #tpu.memory_space<vmem>>, %arg5: memref<1x256xf32, #tpu.memory_space<vmem>>, %arg6: memref<3x256x256xbf16, #tpu.memory_space<vmem>>, %arg7: memref<1x256xf32, #tpu.memory_space<vmem>>, %arg8: memref<3x256x256xbf16, #tpu.memory_space<vmem>>, %arg9: memref<1x256xf32, #tpu.memory_space<vmem>>, %arg10: memref<3x256x128xbf16, #tpu.memory_space<vmem>>, %arg11: memref<1x128xf32, #tpu.memory_space<vmem>>, %arg12: memref<1x16x128xf32, #tpu.memory_space<vmem>>, %arg13: memref<32x32xf32, #tpu.memory_space<vmem>>, %arg14: memref<32x256xf32, #tpu.memory_space<vmem>>, %arg15: memref<32x256xf32, #tpu.memory_space<vmem>>) attributes {dimension_semantics = [#tpu.dimension_semantics<parallel>], iteration_bounds = array<i64: 2>, scalar_prefetch = 0 : i64, scratch_operands = 3 : i64, tpu.core_type = #tpu.core_type<tc>, window_params = [{transform_indices = @transform_0, window_bounds = array<i64: 1, 16, 32>}, {pipeline_mode = #tpu.pipeline_mode<synchronous>, transform_indices = @transform_1, window_bounds = array<i64: 3, 32, 256>}, {pipeline_mode = #tpu.pipeline_mode<synchronous>, transform_indices = @transform_2, window_bounds = array<i64: 1, 256>}, {pipeline_mode = #tpu.pipeline_mode<synchronous>, transform_indices = @transform_3, window_bounds = array<i64: 3, 256, 256>}, {pipeline_mode = #tpu.pipeline_mode<synchronous>, transform_indices = @transform_4, window_bounds = array<i64: 1, 256>}, {pipeline_mode = #tpu.pipeline_mode<synchronous>, transform_indices = @transform_5, window_bounds = array<i64: 3, 256, 256>}, {pipeline_mode = #tpu.pipeline_mode<synchronous>, transform_indices = @transform_6, window_bounds = array<i64: 1, 256>}, {pipeline_mode = #tpu.pipeline_mode<synchronous>, transform_indices = @transform_7, window_bounds = array<i64: 3, 256, 256>}, {pipeline_mode = #tpu.pipeline_mode<synchronous>, transform_indices = @transform_8, window_bounds = array<i64: 1, 256>}, {pipeline_mode = #tpu.pipeline_mode<synchronous>, transform_indices = @transform_9, window_bounds = array<i64: 3, 256, 128>}, {pipeline_mode = #tpu.pipeline_mode<synchronous>, transform_indices = @transform_10, window_bounds = array<i64: 1, 128>}, {transform_indices = @transform_11, window_bounds = array<i64: 1, 16, 128>}]} {
    %cst = arith.constant 0.000000e+00 : f32
    %0 = vector.broadcast %cst : f32 to vector<32x32xf32>
    %c0 = arith.constant 0 : index
    %c0_0 = arith.constant 0 : index
    %1 = vector.load %arg13[%c0, %c0_0] : memref<32x32xf32, #tpu.memory_space<vmem>>, vector<32x32xf32>
    tpu.vector_store %arg13[%c0, %c0_0], %0 {strides = array<i32>} : memref<32x32xf32, #tpu.memory_space<vmem>>, vector<32x32xf32>,
    %cst_1 = arith.constant 0.000000e+00 : f32
    %2 = vector.broadcast %cst_1 : f32 to vector<32x256xf32>
    %c0_2 = arith.constant 0 : index
    %c0_3 = arith.constant 0 : index
    %3 = vector.load %arg14[%c0_2, %c0_3] : memref<32x256xf32, #tpu.memory_space<vmem>>, vector<32x256xf32>
    tpu.vector_store %arg14[%c0_2, %c0_3], %2 {strides = array<i32>} : memref<32x256xf32, #tpu.memory_space<vmem>>, vector<32x256xf32>,
    %cst_4 = arith.constant 0.000000e+00 : f32
    %4 = vector.broadcast %cst_4 : f32 to vector<32x256xf32>
    %c0_5 = arith.constant 0 : index
    %c0_6 = arith.constant 0 : index
    %5 = vector.load %arg15[%c0_5, %c0_6] : memref<32x256xf32, #tpu.memory_space<vmem>>, vector<32x256xf32>
    tpu.vector_store %arg15[%c0_5, %c0_6], %4 {strides = array<i32>} : memref<32x256xf32, #tpu.memory_space<vmem>>, vector<32x256xf32>,
    %c0_7 = arith.constant 0 : index
    %c0_8 = arith.constant 0 : index
    %c0_9 = arith.constant 0 : index
    %6 = vector.load %arg1[%c0_7, %c0_8, %c0_9] : memref<1x16x32xf32, #tpu.memory_space<vmem>>, vector<1x16x32xf32>
    %7 = vector.shape_cast %6 : vector<1x16x32xf32> to vector<16x32xf32>
    %c8 = arith.constant 8 : index
    %c0_10 = arith.constant 0 : index
    %8 = vector.load %arg13[%c8, %c0_10] : memref<32x32xf32, #tpu.memory_space<vmem>>, vector<16x32xf32>
    tpu.vector_store %arg13[%c8, %c0_10], %7 {strides = array<i32>} : memref<32x32xf32, #tpu.memory_space<vmem>>, vector<16x32xf32>,
    %cst_11 = arith.constant 0.000000e+00 : f32
    %9 = vector.broadcast %cst_11 : f32 to vector<16x256xf32>
    %c7 = arith.constant 7 : index
    %c0_12 = arith.constant 0 : index
    %10 = vector.load %arg13[%c7, %c0_12] : memref<32x32xf32, #tpu.memory_space<vmem>>, vector<16x32xf32>
    %11 = arith.truncf %10 : vector<16x32xf32> to vector<16x32xbf16>
    %c0_13 = arith.constant 0 : index
    %c0_14 = arith.constant 0 : index
    %c0_15 = arith.constant 0 : index
    %12 = vector.load %arg2[%c0_13, %c0_14, %c0_15] : memref<3x32x256xbf16, #tpu.memory_space<vmem>>, vector<1x32x256xbf16>
    %13 = vector.shape_cast %12 : vector<1x32x256xbf16> to vector<32x256xbf16>
    %cst_16 = arith.constant dense<0.000000e+00> : vector<16x256xf32>
    %14 = tpu.matmul %11, %13, %cst_16 {dimension_numbers = #tpu.dot_dimension_numbers<[1], [0], [0], [1], [0, 0, 1, 1], [], []>} : vector<16x32xbf16>, vector<32x256xbf16>, vector<16x256xf32> -> vector<16x256xf32>
    %15 = arith.addf %9, %14 : vector<16x256xf32>
    %c8_17 = arith.constant 8 : index
    %c0_18 = arith.constant 0 : index
    %16 = vector.load %arg13[%c8_17, %c0_18] : memref<32x32xf32, #tpu.memory_space<vmem>>, vector<16x32xf32>
    %17 = arith.truncf %16 : vector<16x32xf32> to vector<16x32xbf16>
    %c1 = arith.constant 1 : index
    %c0_19 = arith.constant 0 : index
    %c0_20 = arith.constant 0 : index
    %18 = vector.load %arg2[%c1, %c0_19, %c0_20] : memref<3x32x256xbf16, #tpu.memory_space<vmem>>, vector<1x32x256xbf16>
    %19 = vector.shape_cast %18 : vector<1x32x256xbf16> to vector<32x256xbf16>
    %cst_21 = arith.constant dense<0.000000e+00> : vector<16x256xf32>
    %20 = tpu.matmul %17, %19, %cst_21 {dimension_numbers = #tpu.dot_dimension_numbers<[1], [0], [0], [1], [0, 0, 1, 1], [], []>} : vector<16x32xbf16>, vector<32x256xbf16>, vector<16x256xf32> -> vector<16x256xf32>
    %21 = arith.addf %15, %20 : vector<16x256xf32>
    %c9 = arith.constant 9 : index
    %c0_22 = arith.constant 0 : index
    %22 = vector.load %arg13[%c9, %c0_22] : memref<32x32xf32, #tpu.memory_space<vmem>>, vector<16x32xf32>
    %23 = arith.truncf %22 : vector<16x32xf32> to vector<16x32xbf16>
    %c2 = arith.constant 2 : index
    %c0_23 = arith.constant 0 : index
    %c0_24 = arith.constant 0 : index
    %24 = vector.load %arg2[%c2, %c0_23, %c0_24] : memref<3x32x256xbf16, #tpu.memory_space<vmem>>, vector<1x32x256xbf16>
    %25 = vector.shape_cast %24 : vector<1x32x256xbf16> to vector<32x256xbf16>
    %cst_25 = arith.constant dense<0.000000e+00> : vector<16x256xf32>
    %26 = tpu.matmul %23, %25, %cst_25 {dimension_numbers = #tpu.dot_dimension_numbers<[1], [0], [0], [1], [0, 0, 1, 1], [], []>} : vector<16x32xbf16>, vector<32x256xbf16>, vector<16x256xf32> -> vector<16x256xf32>
    %27 = arith.addf %21, %26 : vector<16x256xf32>
    %c0_26 = arith.constant 0 : index
    %c0_27 = arith.constant 0 : index
    %28 = vector.load %arg3[%c0_26, %c0_27] : memref<1x256xf32, #tpu.memory_space<vmem>>, vector<1x256xf32>
    %29 = vector.broadcast %28 : vector<1x256xf32> to vector<16x256xf32>
    %30 = arith.addf %27, %29 : vector<16x256xf32>
    %cst_28 = arith.constant 0.000000e+00 : f32
    %31 = vector.broadcast %cst_28 : f32 to vector<16x256xf32>
    %32 = arith.maximumf %30, %31 : vector<16x256xf32>
    %c8_29 = arith.constant 8 : index
    %c0_30 = arith.constant 0 : index
    %33 = vector.load %arg14[%c8_29, %c0_30] : memref<32x256xf32, #tpu.memory_space<vmem>>, vector<16x256xf32>
    tpu.vector_store %arg14[%c8_29, %c0_30], %32 {strides = array<i32>} : memref<32x256xf32, #tpu.memory_space<vmem>>, vector<16x256xf32>,
    %cst_31 = arith.constant 0.000000e+00 : f32
    %34 = vector.broadcast %cst_31 : f32 to vector<16x256xf32>
    %c7_32 = arith.constant 7 : index
    %c0_33 = arith.constant 0 : index
    %35 = vector.load %arg14[%c7_32, %c0_33] : memref<32x256xf32, #tpu.memory_space<vmem>>, vector<16x256xf32>
    %36 = arith.truncf %35 : vector<16x256xf32> to vector<16x256xbf16>
    %c0_34 = arith.constant 0 : index
    %c0_35 = arith.constant 0 : index
    %c0_36 = arith.constant 0 : index
    %37 = vector.load %arg4[%c0_34, %c0_35, %c0_36] : memref<3x256x256xbf16, #tpu.memory_space<vmem>>, vector<1x256x256xbf16>
    %38 = vector.shape_cast %37 : vector<1x256x256xbf16> to vector<256x256xbf16>
    %cst_37 = arith.constant dense<0.000000e+00> : vector<16x256xf32>
    %39 = tpu.matmul %36, %38, %cst_37 {dimension_numbers = #tpu.dot_dimension_numbers<[1], [0], [0], [1], [0, 0, 1, 1], [], []>} : vector<16x256xbf16>, vector<256x256xbf16>, vector<16x256xf32> -> vector<16x256xf32>
    %40 = arith.addf %34, %39 : vector<16x256xf32>
    %c8_38 = arith.constant 8 : index
    %c0_39 = arith.constant 0 : index
    %41 = vector.load %arg14[%c8_38, %c0_39] : memref<32x256xf32, #tpu.memory_space<vmem>>, vector<16x256xf32>
    %42 = arith.truncf %41 : vector<16x256xf32> to vector<16x256xbf16>
    %c1_40 = arith.constant 1 : index
    %c0_41 = arith.constant 0 : index
    %c0_42 = arith.constant 0 : index
    %43 = vector.load %arg4[%c1_40, %c0_41, %c0_42] : memref<3x256x256xbf16, #tpu.memory_space<vmem>>, vector<1x256x256xbf16>
    %44 = vector.shape_cast %43 : vector<1x256x256xbf16> to vector<256x256xbf16>
    %cst_43 = arith.constant dense<0.000000e+00> : vector<16x256xf32>
    %45 = tpu.matmul %42, %44, %cst_43 {dimension_numbers = #tpu.dot_dimension_numbers<[1], [0], [0], [1], [0, 0, 1, 1], [], []>} : vector<16x256xbf16>, vector<256x256xbf16>, vector<16x256xf32> -> vector<16x256xf32>
    %46 = arith.addf %40, %45 : vector<16x256xf32>
    %c9_44 = arith.constant 9 : index
    %c0_45 = arith.constant 0 : index
    %47 = vector.load %arg14[%c9_44, %c0_45] : memref<32x256xf32, #tpu.memory_space<vmem>>, vector<16x256xf32>
    %48 = arith.truncf %47 : vector<16x256xf32> to vector<16x256xbf16>
    %c2_46 = arith.constant 2 : index
    %c0_47 = arith.constant 0 : index
    %c0_48 = arith.constant 0 : index
    %49 = vector.load %arg4[%c2_46, %c0_47, %c0_48] : memref<3x256x256xbf16, #tpu.memory_space<vmem>>, vector<1x256x256xbf16>
    %50 = vector.shape_cast %49 : vector<1x256x256xbf16> to vector<256x256xbf16>
    %cst_49 = arith.constant dense<0.000000e+00> : vector<16x256xf32>
    %51 = tpu.matmul %48, %50, %cst_49 {dimension_numbers = #tpu.dot_dimension_numbers<[1], [0], [0], [1], [0, 0, 1, 1], [], []>} : vector<16x256xbf16>, vector<256x256xbf16>, vector<16x256xf32> -> vector<16x256xf32>
    %52 = arith.addf %46, %51 : vector<16x256xf32>
    %c0_50 = arith.constant 0 : index
    %c0_51 = arith.constant 0 : index
    %53 = vector.load %arg5[%c0_50, %c0_51] : memref<1x256xf32, #tpu.memory_space<vmem>>, vector<1x256xf32>
    %54 = vector.broadcast %53 : vector<1x256xf32> to vector<16x256xf32>
    %55 = arith.addf %52, %54 : vector<16x256xf32>
    %cst_52 = arith.constant 0.000000e+00 : f32
    %56 = vector.broadcast %cst_52 : f32 to vector<16x256xf32>
    %57 = arith.maximumf %55, %56 : vector<16x256xf32>
    %c8_53 = arith.constant 8 : index
    %c0_54 = arith.constant 0 : index
    %58 = vector.load %arg15[%c8_53, %c0_54] : memref<32x256xf32, #tpu.memory_space<vmem>>, vector<16x256xf32>
    tpu.vector_store %arg15[%c8_53, %c0_54], %57 {strides = array<i32>} : memref<32x256xf32, #tpu.memory_space<vmem>>, vector<16x256xf32>,
    %cst_55 = arith.constant 0.000000e+00 : f32
    %59 = vector.broadcast %cst_55 : f32 to vector<16x256xf32>
    %c7_56 = arith.constant 7 : index
    %c0_57 = arith.constant 0 : index
    %60 = vector.load %arg15[%c7_56, %c0_57] : memref<32x256xf32, #tpu.memory_space<vmem>>, vector<16x256xf32>
    %61 = arith.truncf %60 : vector<16x256xf32> to vector<16x256xbf16>
    %c0_58 = arith.constant 0 : index
    %c0_59 = arith.constant 0 : index
    %c0_60 = arith.constant 0 : index
    %62 = vector.load %arg6[%c0_58, %c0_59, %c0_60] : memref<3x256x256xbf16, #tpu.memory_space<vmem>>, vector<1x256x256xbf16>
    %63 = vector.shape_cast %62 : vector<1x256x256xbf16> to vector<256x256xbf16>
    %cst_61 = arith.constant dense<0.000000e+00> : vector<16x256xf32>
    %64 = tpu.matmul %61, %63, %cst_61 {dimension_numbers = #tpu.dot_dimension_numbers<[1], [0], [0], [1], [0, 0, 1, 1], [], []>} : vector<16x256xbf16>, vector<256x256xbf16>, vector<16x256xf32> -> vector<16x256xf32>
    %65 = arith.addf %59, %64 : vector<16x256xf32>
    %c8_62 = arith.constant 8 : index
    %c0_63 = arith.constant 0 : index
    %66 = vector.load %arg15[%c8_62, %c0_63] : memref<32x256xf32, #tpu.memory_space<vmem>>, vector<16x256xf32>
    %67 = arith.truncf %66 : vector<16x256xf32> to vector<16x256xbf16>
    %c1_64 = arith.constant 1 : index
    %c0_65 = arith.constant 0 : index
    %c0_66 = arith.constant 0 : index
    %68 = vector.load %arg6[%c1_64, %c0_65, %c0_66] : memref<3x256x256xbf16, #tpu.memory_space<vmem>>, vector<1x256x256xbf16>
    %69 = vector.shape_cast %68 : vector<1x256x256xbf16> to vector<256x256xbf16>
    %cst_67 = arith.constant dense<0.000000e+00> : vector<16x256xf32>
    %70 = tpu.matmul %67, %69, %cst_67 {dimension_numbers = #tpu.dot_dimension_numbers<[1], [0], [0], [1], [0, 0, 1, 1], [], []>} : vector<16x256xbf16>, vector<256x256xbf16>, vector<16x256xf32> -> vector<16x256xf32>
    %71 = arith.addf %65, %70 : vector<16x256xf32>
    %c9_68 = arith.constant 9 : index
    %c0_69 = arith.constant 0 : index
    %72 = vector.load %arg15[%c9_68, %c0_69] : memref<32x256xf32, #tpu.memory_space<vmem>>, vector<16x256xf32>
    %73 = arith.truncf %72 : vector<16x256xf32> to vector<16x256xbf16>
    %c2_70 = arith.constant 2 : index
    %c0_71 = arith.constant 0 : index
    %c0_72 = arith.constant 0 : index
    %74 = vector.load %arg6[%c2_70, %c0_71, %c0_72] : memref<3x256x256xbf16, #tpu.memory_space<vmem>>, vector<1x256x256xbf16>
    %75 = vector.shape_cast %74 : vector<1x256x256xbf16> to vector<256x256xbf16>
    %cst_73 = arith.constant dense<0.000000e+00> : vector<16x256xf32>
    %76 = tpu.matmul %73, %75, %cst_73 {dimension_numbers = #tpu.dot_dimension_numbers<[1], [0], [0], [1], [0, 0, 1, 1], [], []>} : vector<16x256xbf16>, vector<256x256xbf16>, vector<16x256xf32> -> vector<16x256xf32>
    %77 = arith.addf %71, %76 : vector<16x256xf32>
    %c0_74 = arith.constant 0 : index
    %c0_75 = arith.constant 0 : index
    %78 = vector.load %arg7[%c0_74, %c0_75] : memref<1x256xf32, #tpu.memory_space<vmem>>, vector<1x256xf32>
    %79 = vector.broadcast %78 : vector<1x256xf32> to vector<16x256xf32>
    %80 = arith.addf %77, %79 : vector<16x256xf32>
    %cst_76 = arith.constant 0.000000e+00 : f32
    %81 = vector.broadcast %cst_76 : f32 to vector<16x256xf32>
    %82 = arith.maximumf %80, %81 : vector<16x256xf32>
    %c8_77 = arith.constant 8 : index
    %c0_78 = arith.constant 0 : index
    %83 = vector.load %arg14[%c8_77, %c0_78] : memref<32x256xf32, #tpu.memory_space<vmem>>, vector<16x256xf32>
    tpu.vector_store %arg14[%c8_77, %c0_78], %82 {strides = array<i32>} : memref<32x256xf32, #tpu.memory_space<vmem>>, vector<16x256xf32>,
    %cst_79 = arith.constant 0.000000e+00 : f32
    %84 = vector.broadcast %cst_79 : f32 to vector<16x256xf32>
    %c7_80 = arith.constant 7 : index
    %c0_81 = arith.constant 0 : index
    %85 = vector.load %arg14[%c7_80, %c0_81] : memref<32x256xf32, #tpu.memory_space<vmem>>, vector<16x256xf32>
    %86 = arith.truncf %85 : vector<16x256xf32> to vector<16x256xbf16>
    %c0_82 = arith.constant 0 : index
    %c0_83 = arith.constant 0 : index
    %c0_84 = arith.constant 0 : index
    %87 = vector.load %arg8[%c0_82, %c0_83, %c0_84] : memref<3x256x256xbf16, #tpu.memory_space<vmem>>, vector<1x256x256xbf16>
    %88 = vector.shape_cast %87 : vector<1x256x256xbf16> to vector<256x256xbf16>
    %cst_85 = arith.constant dense<0.000000e+00> : vector<16x256xf32>
    %89 = tpu.matmul %86, %88, %cst_85 {dimension_numbers = #tpu.dot_dimension_numbers<[1], [0], [0], [1], [0, 0, 1, 1], [], []>} : vector<16x256xbf16>, vector<256x256xbf16>, vector<16x256xf32> -> vector<16x256xf32>
    %90 = arith.addf %84, %89 : vector<16x256xf32>
    %c8_86 = arith.constant 8 : index
    %c0_87 = arith.constant 0 : index
    %91 = vector.load %arg14[%c8_86, %c0_87] : memref<32x256xf32, #tpu.memory_space<vmem>>, vector<16x256xf32>
    %92 = arith.truncf %91 : vector<16x256xf32> to vector<16x256xbf16>
    %c1_88 = arith.constant 1 : index
    %c0_89 = arith.constant 0 : index
    %c0_90 = arith.constant 0 : index
    %93 = vector.load %arg8[%c1_88, %c0_89, %c0_90] : memref<3x256x256xbf16, #tpu.memory_space<vmem>>, vector<1x256x256xbf16>
    %94 = vector.shape_cast %93 : vector<1x256x256xbf16> to vector<256x256xbf16>
    %cst_91 = arith.constant dense<0.000000e+00> : vector<16x256xf32>
    %95 = tpu.matmul %92, %94, %cst_91 {dimension_numbers = #tpu.dot_dimension_numbers<[1], [0], [0], [1], [0, 0, 1, 1], [], []>} : vector<16x256xbf16>, vector<256x256xbf16>, vector<16x256xf32> -> vector<16x256xf32>
    %96 = arith.addf %90, %95 : vector<16x256xf32>
    %c9_92 = arith.constant 9 : index
    %c0_93 = arith.constant 0 : index
    %97 = vector.load %arg14[%c9_92, %c0_93] : memref<32x256xf32, #tpu.memory_space<vmem>>, vector<16x256xf32>
    %98 = arith.truncf %97 : vector<16x256xf32> to vector<16x256xbf16>
    %c2_94 = arith.constant 2 : index
    %c0_95 = arith.constant 0 : index
    %c0_96 = arith.constant 0 : index
    %99 = vector.load %arg8[%c2_94, %c0_95, %c0_96] : memref<3x256x256xbf16, #tpu.memory_space<vmem>>, vector<1x256x256xbf16>
    %100 = vector.shape_cast %99 : vector<1x256x256xbf16> to vector<256x256xbf16>
    %cst_97 = arith.constant dense<0.000000e+00> : vector<16x256xf32>
    %101 = tpu.matmul %98, %100, %cst_97 {dimension_numbers = #tpu.dot_dimension_numbers<[1], [0], [0], [1], [0, 0, 1, 1], [], []>} : vector<16x256xbf16>, vector<256x256xbf16>, vector<16x256xf32> -> vector<16x256xf32>
    %102 = arith.addf %96, %101 : vector<16x256xf32>
    %c0_98 = arith.constant 0 : index
    %c0_99 = arith.constant 0 : index
    %103 = vector.load %arg9[%c0_98, %c0_99] : memref<1x256xf32, #tpu.memory_space<vmem>>, vector<1x256xf32>
    %104 = vector.broadcast %103 : vector<1x256xf32> to vector<16x256xf32>
    %105 = arith.addf %102, %104 : vector<16x256xf32>
    %cst_100 = arith.constant 0.000000e+00 : f32
    %106 = vector.broadcast %cst_100 : f32 to vector<16x256xf32>
    %107 = arith.maximumf %105, %106 : vector<16x256xf32>
    %c8_101 = arith.constant 8 : index
    %c0_102 = arith.constant 0 : index
    %108 = vector.load %arg15[%c8_101, %c0_102] : memref<32x256xf32, #tpu.memory_space<vmem>>, vector<16x256xf32>
    tpu.vector_store %arg15[%c8_101, %c0_102], %107 {strides = array<i32>} : memref<32x256xf32, #tpu.memory_space<vmem>>, vector<16x256xf32>,
    %cst_103 = arith.constant 0.000000e+00 : f32
    %109 = vector.broadcast %cst_103 : f32 to vector<16x128xf32>
    %c7_104 = arith.constant 7 : index
    %c0_105 = arith.constant 0 : index
    %110 = vector.load %arg15[%c7_104, %c0_105] : memref<32x256xf32, #tpu.memory_space<vmem>>, vector<16x256xf32>
    %111 = arith.truncf %110 : vector<16x256xf32> to vector<16x256xbf16>
    %c0_106 = arith.constant 0 : index
    %c0_107 = arith.constant 0 : index
    %c0_108 = arith.constant 0 : index
    %112 = vector.load %arg10[%c0_106, %c0_107, %c0_108] : memref<3x256x128xbf16, #tpu.memory_space<vmem>>, vector<1x256x128xbf16>
    %113 = vector.shape_cast %112 : vector<1x256x128xbf16> to vector<256x128xbf16>
    %cst_109 = arith.constant dense<0.000000e+00> : vector<16x128xf32>
    %114 = tpu.matmul %111, %113, %cst_109 {dimension_numbers = #tpu.dot_dimension_numbers<[1], [0], [0], [1], [0, 0, 1, 1], [], []>} : vector<16x256xbf16>, vector<256x128xbf16>, vector<16x128xf32> -> vector<16x128xf32>
    %115 = arith.addf %109, %114 : vector<16x128xf32>
    %c8_110 = arith.constant 8 : index
    %c0_111 = arith.constant 0 : index
    %116 = vector.load %arg15[%c8_110, %c0_111] : memref<32x256xf32, #tpu.memory_space<vmem>>, vector<16x256xf32>
    %117 = arith.truncf %116 : vector<16x256xf32> to vector<16x256xbf16>
    %c1_112 = arith.constant 1 : index
    %c0_113 = arith.constant 0 : index
    %c0_114 = arith.constant 0 : index
    %118 = vector.load %arg10[%c1_112, %c0_113, %c0_114] : memref<3x256x128xbf16, #tpu.memory_space<vmem>>, vector<1x256x128xbf16>
    %119 = vector.shape_cast %118 : vector<1x256x128xbf16> to vector<256x128xbf16>
    %cst_115 = arith.constant dense<0.000000e+00> : vector<16x128xf32>
    %120 = tpu.matmul %117, %119, %cst_115 {dimension_numbers = #tpu.dot_dimension_numbers<[1], [0], [0], [1], [0, 0, 1, 1], [], []>} : vector<16x256xbf16>, vector<256x128xbf16>, vector<16x128xf32> -> vector<16x128xf32>
    %121 = arith.addf %115, %120 : vector<16x128xf32>
    %c9_116 = arith.constant 9 : index
    %c0_117 = arith.constant 0 : index
    %122 = vector.load %arg15[%c9_116, %c0_117] : memref<32x256xf32, #tpu.memory_space<vmem>>, vector<16x256xf32>
    %123 = arith.truncf %122 : vector<16x256xf32> to vector<16x256xbf16>
    %c2_118 = arith.constant 2 : index
    %c0_119 = arith.constant 0 : index
    %c0_120 = arith.constant 0 : index
    %124 = vector.load %arg10[%c2_118, %c0_119, %c0_120] : memref<3x256x128xbf16, #tpu.memory_space<vmem>>, vector<1x256x128xbf16>
    %125 = vector.shape_cast %124 : vector<1x256x128xbf16> to vector<256x128xbf16>
    %cst_121 = arith.constant dense<0.000000e+00> : vector<16x128xf32>
    %126 = tpu.matmul %123, %125, %cst_121 {dimension_numbers = #tpu.dot_dimension_numbers<[1], [0], [0], [1], [0, 0, 1, 1], [], []>} : vector<16x256xbf16>, vector<256x128xbf16>, vector<16x128xf32> -> vector<16x128xf32>
    %127 = arith.addf %121, %126 : vector<16x128xf32>
    %c0_122 = arith.constant 0 : index
    %c0_123 = arith.constant 0 : index
    %128 = vector.load %arg11[%c0_122, %c0_123] : memref<1x128xf32, #tpu.memory_space<vmem>>, vector<1x128xf32>
    %129 = vector.broadcast %128 : vector<1x128xf32> to vector<16x128xf32>
    %130 = arith.addf %127, %129 : vector<16x128xf32>
    %c0_124 = arith.constant 0 : index
    %c0_125 = arith.constant 0 : index
    %c0_126 = arith.constant 0 : index
    %131 = vector.load %arg12[%c0_124, %c0_125, %c0_126] : memref<1x16x128xf32, #tpu.memory_space<vmem>>, vector<1x16x128xf32>
    %132 = vector.shape_cast %131 : vector<1x16x128xf32> to vector<16x128xf32>
    %133 = vector.shape_cast %130 : vector<16x128xf32> to vector<1x16x128xf32>
    tpu.vector_store %arg12[%c0_124, %c0_125, %c0_126], %133 {strides = array<i32>} : memref<1x16x128xf32, #tpu.memory_space<vmem>>, vector<1x16x128xf32>,
    return
  }
  func.func @transform_0(%arg0: i32) -> (i32, i32, i32) {
    %c0_i32 = arith.constant 0 : i32
    %c0_i32_0 = arith.constant 0 : i32
    %c0_i32_1 = arith.constant 0 : i32
    return %arg0, %c0_i32, %c0_i32_0 : i32, i32, i32
  }
  func.func @transform_1(%arg0: i32) -> (i32, i32, i32) {
    %c0_i32 = arith.constant 0 : i32
    %c0_i32_0 = arith.constant 0 : i32
    %c0_i32_1 = arith.constant 0 : i32
    %c0_i32_2 = arith.constant 0 : i32
    return %c0_i32, %c0_i32_0, %c0_i32_1 : i32, i32, i32
  }
  func.func @transform_2(%arg0: i32) -> (i32, i32) {
    %c0_i32 = arith.constant 0 : i32
    %c0_i32_0 = arith.constant 0 : i32
    %c0_i32_1 = arith.constant 0 : i32
    return %c0_i32, %c0_i32_0 : i32, i32
  }
  func.func @transform_3(%arg0: i32) -> (i32, i32, i32) {
    %c0_i32 = arith.constant 0 : i32
    %c0_i32_0 = arith.constant 0 : i32
    %c0_i32_1 = arith.constant 0 : i32
    %c0_i32_2 = arith.constant 0 : i32
    return %c0_i32, %c0_i32_0, %c0_i32_1 : i32, i32, i32
  }
  func.func @transform_4(%arg0: i32) -> (i32, i32) {
    %c0_i32 = arith.constant 0 : i32
    %c0_i32_0 = arith.constant 0 : i32
    %c0_i32_1 = arith.constant 0 : i32
    return %c0_i32, %c0_i32_0 : i32, i32
  }
  func.func @transform_5(%arg0: i32) -> (i32, i32, i32) {
    %c0_i32 = arith.constant 0 : i32
    %c0_i32_0 = arith.constant 0 : i32
    %c0_i32_1 = arith.constant 0 : i32
    %c0_i32_2 = arith.constant 0 : i32
    return %c0_i32, %c0_i32_0, %c0_i32_1 : i32, i32, i32
  }
  func.func @transform_6(%arg0: i32) -> (i32, i32) {
    %c0_i32 = arith.constant 0 : i32
    %c0_i32_0 = arith.constant 0 : i32
    %c0_i32_1 = arith.constant 0 : i32
    return %c0_i32, %c0_i32_0 : i32, i32
  }
  func.func @transform_7(%arg0: i32) -> (i32, i32, i32) {
    %c0_i32 = arith.constant 0 : i32
    %c0_i32_0 = arith.constant 0 : i32
    %c0_i32_1 = arith.constant 0 : i32
    %c0_i32_2 = arith.constant 0 : i32
    return %c0_i32, %c0_i32_0, %c0_i32_1 : i32, i32, i32
  }
  func.func @transform_8(%arg0: i32) -> (i32, i32) {
    %c0_i32 = arith.constant 0 : i32
    %c0_i32_0 = arith.constant 0 : i32
    %c0_i32_1 = arith.constant 0 : i32
    return %c0_i32, %c0_i32_0 : i32, i32
  }
  func.func @transform_9(%arg0: i32) -> (i32, i32, i32) {
    %c0_i32 = arith.constant 0 : i32
    %c0_i32_0 = arith.constant 0 : i32
    %c0_i32_1 = arith.constant 0 : i32
    %c0_i32_2 = arith.constant 0 : i32
    return %c0_i32, %c0_i32_0, %c0_i32_1 : i32, i32, i32
  }
  func.func @transform_10(%arg0: i32) -> (i32, i32) {
    %c0_i32 = arith.constant 0 : i32
    %c0_i32_0 = arith.constant 0 : i32
    %c0_i32_1 = arith.constant 0 : i32
    return %c0_i32, %c0_i32_0 : i32, i32
  }
  func.func @transform_11(%arg0: i32) -> (i32, i32, i32) {
    %c0_i32 = arith.constant 0 : i32
    %c0_i32_0 = arith.constant 0 : i32
    %c0_i32_1 = arith.constant 0 : i32
    return %arg0, %c0_i32, %c0_i32_0 : i32, i32, i32
  }
}

</mosaic_0001>

<bundles_post_ra>
// kernel: tpu_custom_call.1
= control target key start
LH: loop header
LB: loop body
LE: loop exit
PB: predicated region body
PF: predicated region fallthrough
CT: control target
= control target key end

     0   :  { %s5784_s0 = inlined_call_operand.hbm [shape: f32[2,16,32], index: 0, kind: input, shape index: {}]   ;;  %s5785_s1 = inlined_call_operand.hbm [shape: bf16[3,32,256], index: 1, kind: input, shape index: {}]   ;;  %s5786_s2 = inlined_call_operand.vmem [shape: f32[1,256], index: 2, kind: input, shape index: {}]   ;;  %s5787_s3 = inlined_call_operand.hbm [shape: bf16[3,256,256], index: 3, kind: input, shape index: {}]   ;;  %s5788_s4 = inlined_call_operand.vmem [shape: f32[1,256], index: 4, kind: input, shape index: {}]   ;;  %s5789_s5 = inlined_call_operand.hbm [shape: bf16[3,256,256], index: 5, kind: input, shape index: {}]   ;;  %s5790_s6 = inlined_call_operand.vmem [shape: f32[1,256], index: 6, kind: input, shape index: {}]   ;;  %s5791_s7 = inlined_call_operand.hbm [shape: bf16[3,256,256], index: 7, kind: input, shape index: {}]   ;;  %s5792_s8 = inlined_call_operand.vmem [shape: f32[1,256], index: 8, kind: input, shape index: {}]   ;;  %s5793_s9 = inlined_call_operand.hbm [shape: bf16[3,256,128], index: 9, kind: input, shape index: {}]   ;;  %s5794_s10 = inlined_call_operand.vmem [shape: f32[1,128], index: 10, kind: input, shape index: {}]   ;;  %s5795_s11 = inlined_call_operand.hbm [shape: f32[2,16,128], index: 11, kind: output, shape index: {}]  }
   0x1   :  { %5801 = sst [smem:[#allocation22_spill]] %s5785_s1 }
   0x2   :  { %5802 = sst [smem:[#allocation23_spill]] %s5792_s8 }
   0x3   :  { %5803 = sst [smem:[#allocation24_spill]] %s5794_s10 }
   0x4   :  { %5804 = sst [smem:[#allocation25_spill]] %s5795_s11 }
   0x5   :  { %16 = vsyncpa [#allocation6], 0 }
   0x6   :  { %18 = vsyncpa [#allocation6 + $0x1], 0 }
   0x7   :  { %19 = vsyncpa [#allocation9], 0 }
   0x8   :  { %20 = vsyncpa [#allocation12], 0 }
   0x9   :  { %21 = vsyncpa [#allocation15], 0 }
   0xa   :  { %22 = vsyncpa [#allocation7], 0 }
   0xb   :  { %24 = vsyncpa [#allocation7 + $0x1], 0  ;;  %s5365_s17 = smov 0   ;;  %s5367_s18 = smov 0  }
   0xc   :  { %s5369_s19 = smov 0   ;;  %s5371_s20 = smov 0  }
   0xd LB: > { %s5290_s21 = smov [#allocation8]   ;;  %s5386_s23 = sadd.s32 4294967295, %s5288_s20   ;;  %s5288_s20 = sphi %s5371_s20, %s5831_s20   ;;  %s5284_s19 = sphi %s5369_s19, %s5830_s19   ;;  %s5280_s18 = sphi %s5367_s18, %s5829_s18   ;;  %s5276_s17 = sphi %s5365_s17, %s5828_s17  }
   0xe   : > { %s309_s22 = sshll.u32 %s5290_s21, 4  ;;  %p3962_p0 = scmp.ge.s32.totalorder %s5288_s20, 1  ;;  %s5391_s22 = int_to_ptr.vmem [resolvable:$true] %s309_s22 }
   0xf   : > { %p5797_p1 = scmp.eq.s32.totalorder %s5386_s23, 0  ;;  %p297_p2 = scmp.lt.s32.totalorder %s5288_s20, 3 }
  0x10   : > { %s5291_s25 = smov [#allocation11]   ;;  %s5292_s28 = smov [#allocation10]  }
  0x11   : > { %p5393_p3 = pnand %p3962_p0, %p297_p2  ;;  %s341_s26 = sshll.u32 %s5291_s25, 4  ;;  %s5406_s26 = int_to_ptr.vmem [resolvable:$true] %s341_s26 }
  0x12   : > { %s325_s29 = sshll.u32 %s5292_s28, 4  ;;  %s5807_s1 = sld [smem:[#allocation22_spill]]  ;;  %s5408_s29 = int_to_ptr.vmem [resolvable:$true] %s325_s29 }
  0x13   : > { %s5805_s24 = scalar_select %p5393_p3, 1, 0 }
  0x14   : > { %p4461_p5 = pneg %p5393_p3 }
  0x16   : > { %p5402_p6 = pnand %p4461_p5, %p5797_p1 }
  0x18   : > { %s5040_s13 = scalar_lea.hbm %s5807_s1, 1536  ;;  %p5418_p8 = pneg %p5402_p6 }
  0x19   : > { %p5041_p7 = scmp.ne.s32.totalorder %s5807_s1, %s5040_s13  ;;  %p5047_p11 = scmp.lt.u32.totalorder %s5040_s13, %s5807_s1 }
  0x1b   : > { %p5043_p9 = pnand %p5418_p8, %p5041_p7 }
  0x1d   : > { %p5044_p10 = pneg %p5043_p9 }
  0x1f   : > { %p5049_p12 = pnand %p5047_p11, %p5044_p10 }
  0x21   : > { %5052 = shalt.err (!%p5049_p12)
}
  0x22   : > { %s5053_s28 = scalar_lea.vmem %s5391_s22, 1536  ;;  %p5061_p5 = scmp.lt.s32.totalorder %s5391_s22, %s5391_s22 }
  0x23   : > { %p5054_p13 = scmp.ne.s32.totalorder %s5391_s22, %s5053_s28  ;;  %p5062_p4 = scmp.lt.s32.totalorder %s5053_s28, %s5053_s28 }
  0x25   : > { %p5056_p0 = pnand %p5054_p13, %p5418_p8  ;;  %p5063_p7 = por %p5062_p4, %p5061_p5 }
  0x27   : > { %p5057_p2 = pneg %p5056_p0 }
  0x29   : > { %p5064_p9 = pnand %p5063_p7, %p5057_p2 }
  0x2b   : > { %5067 = shalt.err (!%p5064_p9)
}
  0x2c   : > { %s5799_s30 = smov 128   ;;  %s5294_s12 = smov 8  }
  0x2d   : > { %4464 = dma.hbm_to_vmem [thread:$0]  (!%p5402_p6), %s5807_s1, 1536, %s5391_s22, [#allocation9], %s5799_s30, %s5799_s30, %s5294_s12  }
  0x2e   : > { %s5068_s25 = scalar_lea.hbm %s5789_s5, 12288 }
  0x2f   : > { %p5069_p4 = scmp.ne.s32.totalorder %s5789_s5, %s5068_s25  ;;  %p5075_p12 = scmp.lt.u32.totalorder %s5068_s25, %s5789_s5 }
  0x31   : > { %p5071_p10 = pnand %p5069_p4, %p5418_p8 }
  0x33   : > { %p5072_p11 = pneg %p5071_p10 }
  0x35   : > { %p5077_p13 = pnand %p5075_p12, %p5072_p11 }
  0x37   : > { %5080 = shalt.err (!%p5077_p13)
}
  0x38   : > { %s5081_s22 = scalar_lea.vmem %s5406_s26, 12288  ;;  %p5089_p7 = scmp.lt.s32.totalorder %s5406_s26, %s5406_s26 }
  0x39   : > { %p5082_p0 = scmp.ne.s32.totalorder %s5406_s26, %s5081_s22  ;;  %p5090_p9 = scmp.lt.s32.totalorder %s5081_s22, %s5081_s22 }
  0x3b   : > { %p5084_p2 = pnand %p5082_p0, %p5418_p8  ;;  %p5091_p4 = por %p5090_p9, %p5089_p7 }
  0x3d   : > { %p5085_p5 = pneg %p5084_p2 }
  0x3f   : > { %p5092_p10 = pnand %p5091_p4, %p5085_p5 }
  0x41   : > { %5095 = shalt.err (!%p5092_p10)
}
  0x42   : > { %4470 = dma.hbm_to_vmem [thread:$0]  (!%p5402_p6), %s5789_s5, 12288, %s5406_s26, [#allocation12], %s5799_s30, %s5799_s30, %s5294_s12  }
  0x43   : > { %s5096_s14 = scalar_lea.hbm %s5787_s3, 12288 }
  0x44   : > { %p5097_p11 = scmp.ne.s32.totalorder %s5787_s3, %s5096_s14  ;;  %p5103_p0 = scmp.lt.u32.totalorder %s5096_s14, %s5787_s3 }
  0x46   : > { %p5099_p12 = pnand %p5097_p11, %p5418_p8 }
  0x48   : > { %p5100_p13 = pneg %p5099_p12 }
  0x4a   : > { %p5105_p2 = pnand %p5103_p0, %p5100_p13 }
  0x4c   : > { %5108 = shalt.err (!%p5105_p2)
}
  0x4d   : > { %s5109_s26 = scalar_lea.vmem %s5408_s29, 12288  ;;  %p5117_p4 = scmp.lt.s32.totalorder %s5408_s29, %s5408_s29 }
  0x4e   : > { %p5110_p5 = scmp.ne.s32.totalorder %s5408_s29, %s5109_s26  ;;  %p5118_p10 = scmp.lt.s32.totalorder %s5109_s26, %s5109_s26 }
  0x50   : > { %p5112_p7 = pnand %p5110_p5, %p5418_p8  ;;  %p5119_p11 = por %p5118_p10, %p5117_p4 }
  0x52   : > { %p5113_p9 = pneg %p5112_p7 }
  0x54   : > { %p5120_p12 = pnand %p5119_p11, %p5113_p9 }
  0x56   : > { %5123 = shalt.err (!%p5120_p12)
}
  0x57   : > { %4467 = dma.hbm_to_vmem [thread:$0]  (!%p5402_p6), %s5787_s3, 12288, %s5408_s29, [#allocation9], %s5799_s30, %s5799_s30, %s5294_s12  }
  0x58   : > { %s5295_s10 = smov [#allocation13]   ;;  %s5296_s13 = smov [#allocation14]  }
  0x59   : > { %s357_s11 = sshll.u32 %s5295_s10, 4  ;;  %s373_s14 = sshll.u32 %s5296_s13, 4  ;;  %s358_s11 = int_to_ptr.vmem [resolvable:$true] %s357_s11  ;;  %s374_s14 = int_to_ptr.vmem [resolvable:$true] %s373_s14 }
  0x5a   : > { %s5124_s25 = scalar_lea.hbm %s5791_s7, 12288 }
  0x5b   : > { %p5125_p13 = scmp.ne.s32.totalorder %s5791_s7, %s5124_s25  ;;  %p5131_p5 = scmp.lt.u32.totalorder %s5124_s25, %s5791_s7 }
  0x5d   : > { %p5127_p0 = pnand %p5125_p13, %p5418_p8 }
  0x5f   : > { %p5128_p2 = pneg %p5127_p0 }
  0x61   : > { %p5133_p7 = pnand %p5131_p5, %p5128_p2 }
  0x63   : > { %5136 = shalt.err (!%p5133_p7)
}
  0x64   : > { %s5137_s29 = scalar_lea.vmem %s358_s11, 12288  ;;  %p5145_p11 = scmp.lt.s32.totalorder %s358_s11, %s358_s11 }
  0x65   : > { %p5138_p9 = scmp.ne.s32.totalorder %s358_s11, %s5137_s29  ;;  %p5146_p12 = scmp.lt.s32.totalorder %s5137_s29, %s5137_s29 }
  0x67   : > { %p5140_p4 = pnand %p5138_p9, %p5418_p8  ;;  %p5147_p1 = por %p5146_p12, %p5145_p11 }
  0x69   : > { %p5141_p10 = pneg %p5140_p4 }
  0x6b   : > { %p5148_p3 = pnand %p5147_p1, %p5141_p10 }
  0x6d   : > { %5151 = shalt.err (!%p5148_p3)
}
  0x6e   : > { %4473 = dma.hbm_to_vmem [thread:$0]  (!%p5402_p6), %s5791_s7, 12288, %s358_s11, [#allocation12], %s5799_s30, %s5799_s30, %s5294_s12  }
  0x6f   : > { %s5152_s15 = scalar_lea.hbm %s5793_s9, 6144 }
  0x70   : > { %p5153_p1 = scmp.ne.s32.totalorder %s5793_s9, %s5152_s15  ;;  %p5159_p0 = scmp.lt.u32.totalorder %s5152_s15, %s5793_s9 }
  0x72   : > { %p5155_p3 = pnand %p5153_p1, %p5418_p8 }
  0x74   : > { %p5156_p13 = pneg %p5155_p3 }
  0x76   : > { %p5161_p2 = pnand %p5159_p0, %p5156_p13 }
  0x78   : > { %5164 = shalt.err (!%p5161_p2)
}
  0x79   : > { %s5165_s22 = scalar_lea.vmem %s374_s14, 6144  ;;  %p5173_p4 = scmp.lt.s32.totalorder %s374_s14, %s374_s14 }
  0x7a   : > { %p5166_p5 = scmp.ne.s32.totalorder %s374_s14, %s5165_s22  ;;  %p5174_p10 = scmp.lt.s32.totalorder %s5165_s22, %s5165_s22 }
  0x7c   : > { %p5168_p7 = pnand %p5166_p5, %p5418_p8  ;;  %p5175_p11 = por %p5174_p10, %p5173_p4 }
  0x7e   : > { %p5169_p9 = pneg %p5168_p7 }
  0x80   : > { %p5176_p12 = pnand %p5175_p11, %p5169_p9 }
  0x82   : > { %5179 = shalt.err (!%p5176_p12)
}
  0x83   : > { %s5297_s11 = smov 64   ;;  %s5298_s16 = smov 4  }
  0x84   : > { %4476 = dma.hbm_to_vmem [thread:$0]  (!%p5402_p6), %s5793_s9, 6144, %s374_s14, [#allocation15], %s5297_s11, %s5297_s11, %s5298_s16  }
  0x85   : > { %s3961_s8 = sadd.s32 4294967294, %s5288_s20   ;;  %s5535_s10 = sadd.s32 1, %s5288_s20  }
  0x86   : > { %s37_s13 = sadd.s32 1, %s5284_s19  ;;  %s34_s15 = ssub.s32 %s5288_s20, %s5535_s10 }
  0x87   : > { %p44_p8 = scmp.ne.s32.totalorder %s5284_s19, %s5280_s18  ;;  %p35_p1 = scmp.eq.s32.totalorder %s34_s15, 0 }
  0x88   : > { %p45_p3 = scmp.eq.s32.totalorder %s5288_s20, 0  ;;  %p50_p13 = scmp.ne.s32.totalorder %s5280_s18, %s5276_s17 }
  0x89   : > { %p284_p0 = scmp.eq.s32.totalorder %s5386_s23, 1  ;;  %p5809_p5 = scmp.eq.s32.totalorder %s5386_s23, 0 }
  0x8a   : > { %s5547_s21 = scalar_select %p35_p1, %s5284_s19, %s37_s13  }
  0x8b   : > { %p46_p2 = por %p45_p3, %p44_p8  ;;  %p5551_p7 = por %p5809_p5, %p50_p13 }
  0x8c   : > { %p5555_p6 = por %p284_p0, %p44_p8  ;;  %p290_p9 = scmp.eq.s32.totalorder %s3961_s8, 1 }
  0x8d   : > { %p4490_p4 = scmp.lt.s32.totalorder %s5288_s20, 2  ;;  %s390_s25 = sand.u32 1, %s5284_s19  }
  0x8e   : > { %s5811_s14 = scalar_select %p5555_p6, 1, 0 }
  0x8f   : > { %p5561_p10 = por %p290_p9, %p50_p13  ;;  %s3969_s26 = sshll.u32 %s390_s25, 4 }
  0x90   : > { %s4337_s22 = sshll.u32 %s5288_s20, 8  ;;  %s394_s1 = scalar_lea.vmem [#allocation5], %s3969_s26 }
  0x91   : > { %s5812_s28 = scalar_select %p5561_p10, 1, 0 }
  0x92   : > { %s5569_s29 = scalar_lea.hbm %s5784_s0, %s4337_s22  ;;  %s401_s13 = sshll.u32 %s394_s1, 4  ;;  %s5575_s13 = int_to_ptr.vmem [resolvable:$true] %s401_s13 }
  0x93   : > { %p5571_p11 = pnand %p4490_p4, %p46_p2  ;;  %s5577_s15 = scalar_lea.sflag [#allocation6], %s390_s25 }
  0x94   : > { %s5180_s30 = scalar_lea.hbm %s5569_s29, 256  ;;  %s5185_s11 = scalar_lea.hbm %s5784_s0, 512 }
  0x95   : > { %p5181_p12 = scmp.ne.s32.totalorder %s5569_s29, %s5180_s30  ;;  %p5182_p8 = pneg %p5571_p11 }
  0x96   : > { %p5186_p13 = scmp.lt.u32.totalorder %s5569_s29, %s5784_s0  ;;  %p5187_p0 = scmp.lt.u32.totalorder %s5185_s11, %s5180_s30 }
  0x97   : > { %p5183_p1 = pnand %p5182_p8, %p5181_p12  ;;  %p5189_p5 = scmp.lt.u32.totalorder %s5180_s30, %s5569_s29 }
  0x98   : > { %p5188_p2 = por %p5187_p0, %p5186_p13 }
  0x99   : > { %p5184_p3 = pneg %p5183_p1 }
  0x9a   : > { %p5190_p9 = por %p5189_p5, %p5188_p2 }
  0x9c   : > { %p5191_p4 = pnand %p5190_p9, %p5184_p3 }
  0x9e   : > { %5194 = shalt.err (!%p5191_p4)
}
  0x9f   : > { %s5195_s25 = scalar_lea.vmem %s5575_s13, 256  ;;  %s5299_s26 = smov [#allocation5]  }
  0xa0   : > { %p5196_p12 = scmp.ne.s32.totalorder %s5575_s13, %s5195_s25  ;;  %s5200_s22 = sshll.u32 %s5299_s26, 4  ;;  %s5201_s22 = int_to_ptr.vmem [resolvable:$false] %s5200_s22 }
  0xa1   : > { %s5202_s16 = scalar_lea.vmem %s5201_s22, 512  ;;  %p5203_p6 = scmp.lt.s32.totalorder %s5575_s13, %s5201_s22 }
  0xa2   : > { %p5198_p1 = pnand %p5196_p12, %p5182_p8  ;;  %p5204_p13 = scmp.lt.s32.totalorder %s5202_s16, %s5195_s25 }
  0xa4   : > { %p5199_p10 = pneg %p5198_p1  ;;  %p5205_p0 = por %p5204_p13, %p5203_p6 }
  0xa6   : > { %p5206_p2 = pnand %p5205_p0, %p5199_p10 }
  0xa8   : > { %5209 = shalt.err (!%p5206_p2)
}
  0xa9   : > { %s5814_s30 = smov 128   ;;  %p5815_p8 = scmp.ne.s32.totalorder %s5805_s24, 0 }
  0xaa   : > { %4480 = dma.hbm_to_vmem [thread:$0]  (!%p5571_p11), %s5569_s29, 256, %s5575_s13, %s5577_s15, %s5814_s30, %s5814_s30, %s5294_s12  }
  0xab   : > { %413 = sbr.rel (%p5815_p8) target bundleno = 1738 (0x6ca), region = 64  ;;  %s5611_s11 = sand.u32 (!%p5815_p8), 1, %s5280_s18  }
  0xac   : > { %s3973_s1 = sshll.u32 (!%p5815_p8), %s5611_s11, 4  ;;  %s416_s25 = scalar_lea.sflag (!%p5815_p8), [#allocation6], %s5611_s11 }
  0xad   : > { %s5617_s8 = scalar_lea.vmem (!%p5815_p8), [#allocation5], %s3973_s1 }
  0xb2   : > { %5255 = dma.done.wait (%p5551_p7), %s416_s25, 256  }
  0xb3   : > { %5257 = vsyncadd (%p5551_p7), %s416_s25, 4294967040  ;;  %p5816_p6 = scmp.eq.s32.totalorder %s5386_s23, 0 }
  0xb5   : > { %5259 = dma.done.wait (%p5816_p6), [#allocation9], 13824   ;;  %p5817_p10 = pmov %p5816_p6 }
  0xb6   : > { %p5818_p11 = pmov %p5816_p6 }
  0xb7   : > { %5261 = vsyncadd (%p5817_p10), [#allocation9], 4294953472 }
  0xb8   : > { %5263 = dma.done.wait (%p5818_p11), [#allocation12], 24576   ;;  %p5819_p3 = pmov %p5816_p6 }
  0xba   : > { %5265 = vsyncadd (%p5819_p3), [#allocation12], 4294942720  ;;  %p5820_p5 = pmov %p5819_p3 }
  0xbb   : > { %p5821_p9 = pmov %p5819_p3 }
  0xbc   : > { %5267 = dma.done.wait (%p5820_p5), [#allocation15], 6144  }
  0xbd   : > { %5269 = vsyncadd (%p5821_p9), [#allocation15], 4294961152  ;;  %vm479_vm0 = vcmask 261120   ;;  %v5300_v0 = vmov 0   ;;  %v5301_v1 = vmov 0.0   ;;  %v500_v6 = vld [vmem:[%s5617_s8] sm:$0xff] }
  0xbe   : > { %574 = vmatprep.mubr.bf16.mxu0 %v5300_v0  ;;  %480 = vst.msk [vmem:[#allocation2] sm:$0xff] %vm479_vm0, %v5301_v1  ;;  %481 = vst.msk [vmem:[#allocation2 + $0x8] sm:$0xff] %vm479_vm0, %v5301_v1  ;;  %v4542_v2 = vld [vmem:[#allocation8 + $0x24] ss:$8 sps:$4 sm:$0xff]   ;;  %v4544_v3 = vld [vmem:[#allocation8 + $0x20] ss:$8 sps:$4 sm:$0xff]  }
  0xbf   : > { %482 = vst.msk [vmem:[#allocation2 + $0x10] sm:$0xff] %vm479_vm0, %v5301_v1  ;;  %483 = vst.msk [vmem:[#allocation2 + $0x18] sm:$0xff] %vm479_vm0, %v5301_v1  ;;  %542 = vmatprep.subr.bf16.mxu0 %v4542_v2  ;;  %v4545_v4 = vld [vmem:[#allocation8 + $0x34] ss:$8 sps:$4 sm:$0xff]   ;;  %v4547_v5 = vld [vmem:[#allocation8 + $0x30] ss:$8 sps:$4 sm:$0xff]  }
  0xc0   : > { %484 = vst [vmem:[#allocation3] sm:$0xff] %v5301_v1  ;;  %485 = vst [vmem:[#allocation3 + $0x8] sm:$0xff] %v5301_v1  ;;  %543 = vmatpush1.bf16.msra.mxu0 %v4544_v3  ;;  %v501_v7 = vld [vmem:[%s5617_s8 + $0x8] sm:$0xff]  ;;  %vm1035_vm1 = vsmask.f32 4352  ;;  %s5822_s16 = sld [smem:[#allocation23_spill]] }
  0xc1   : > { %490 = vst [vmem:[#allocation3 + $0x30] sm:$0xff] %v5301_v1  ;;  %491 = vst [vmem:[#allocation3 + $0x38] sm:$0xff] %v5301_v1  ;;  %544 = vmatprep.subr.bf16.mxu0 %v4545_v4  ;;  %v4550_v8 = vld [vmem:[#allocation8 + $0x4] ss:$8 sps:$4 sm:$0xff]   ;;  %v4548_v11 = vld [vmem:[#allocation8] ss:$8 sps:$4 sm:$0xff]  }
  0xc2   : > { %492 = vst [vmem:[#allocation4] sm:$0xff] %v5301_v1  ;;  %493 = vst [vmem:[#allocation4 + $0x8] sm:$0xff] %v5301_v1  ;;  %v4553_v13 = vld [vmem:[#allocation8 + $0x14] ss:$8 sps:$4 sm:$0xff]   ;;  %v4566_v14 = vld [vmem:[#allocation10 + $0x4] ss:$8 sps:$4 sm:$0xff]  }
  0xc3   : > { %498 = vst [vmem:[#allocation4 + $0x30] sm:$0xff] %v5301_v1  ;;  %499 = vst [vmem:[#allocation4 + $0x38] sm:$0xff] %v5301_v1  ;;  %v4568_v15 = vld [vmem:[#allocation10] ss:$8 sps:$4 sm:$0xff]   ;;  %v4551_v16 = vld [vmem:[#allocation8 + $0x10] ss:$8 sps:$4 sm:$0xff]   ;;  %1232 = vmatprep.subr.bf16.mxu1 %v4566_v14 }
  0xc4   : > { %502 = vst.msk [vmem:[#allocation2 + $0x8] sm:$0xff] %vm479_vm0, %v500_v6  ;;  %503 = vst.msk [vmem:[#allocation2 + $0x10] sm:$0xff] %vm479_vm0, %v501_v7  ;;  %545 = vmatpush1.bf16.msra.mxu0 %v4547_v5  ;;  %v4556_v17 = vld [vmem:[#allocation8 + $0x44] ss:$8 sps:$4 sm:$0xff]   ;;  %v4572_v18 = vld [vmem:[#allocation10 + $0x14] ss:$8 sps:$4 sm:$0xff]   ;;  %1233 = vmatpush1.bf16.msra.mxu1 %v4568_v15 }
  0xc5   : > { %608 = vmatprep.subr.bf16.mxu0 %v4550_v8  ;;  %v4574_v19 = vld [vmem:[#allocation10 + $0x10] ss:$8 sps:$4 sm:$0xff]   ;;  %1234 = vmatprep.subr.bf16.mxu1 %v4572_v18  ;;  %v4578_v22 = vld [vmem:[#allocation10 + $0x24] ss:$8 sps:$4 sm:$0xff]   ;;  %v4580_v23 = vld [vmem:[#allocation10 + $0x20] ss:$8 sps:$4 sm:$0xff]  }
  0xc6   : > { %v4584_v25 = vld [vmem:[#allocation10 + $0x34] ss:$8 sps:$4 sm:$0xff]   ;;  %v4554_v26 = vld [vmem:[#allocation8 + $0x40] ss:$8 sps:$4 sm:$0xff]   ;;  %v4586_v28 = vld [vmem:[#allocation10 + $0x30] ss:$8 sps:$4 sm:$0xff]  }
  0xc7   : > { %v4559_v27 = vld [vmem:[#allocation8 + $0x54] ss:$8 sps:$4 sm:$0xff]   ;;  %v4590_v29 = vld [vmem:[#allocation10 + $0x44] ss:$8 sps:$4 sm:$0xff]   ;;  %v4557_v30 = vld [vmem:[#allocation8 + $0x50] ss:$8 sps:$4 sm:$0xff]  }
  0xc8   : > { %1235 = vmatpush1.bf16.msra.mxu1 %v4574_v19  ;;  %v4562_v31 = vld [vmem:[#allocation10 + $0x104] ss:$8 sps:$4 sm:$0xff]   ;;  %v4592_v32 = vld [vmem:[#allocation10 + $0x40] ss:$8 sps:$4 sm:$0xff]   ;;  %v4596_v33 = vld [vmem:[#allocation10 + $0x54] ss:$8 sps:$4 sm:$0xff]  }
  0xc9   : > { %1236 = vmatprep.subr.bf16.mxu1 %v4578_v22  ;;  %v4598_v36 = vld [vmem:[#allocation10 + $0x50] ss:$8 sps:$4 sm:$0xff]   ;;  %v4602_v38 = vld [vmem:[#allocation10 + $0x64] ss:$8 sps:$4 sm:$0xff]   ;;  %v4560_v39 = vld [vmem:[#allocation10 + $0x100] ss:$8 sps:$4 sm:$0xff]  }
  0xca   : > { %v4565_v40 = vld [vmem:[#allocation10 + $0x114] ss:$8 sps:$4 sm:$0xff]   ;;  %v4604_v41 = vld [vmem:[#allocation10 + $0x60] ss:$8 sps:$4 sm:$0xff]   ;;  %v4563_v42 = vld [vmem:[#allocation10 + $0x110] ss:$8 sps:$4 sm:$0xff]  }
  0xcb   : > { %v511_v9 = vld [vmem:[#allocation2 + $0x8] sm:$0xff]  ;;  %v512_v10 = vld [vmem:[#allocation2 + $0x10] sm:$0xff]  ;;  %vm1318_vm2 = vsmask.f32 7424  ;;  %s5823_s8 = sld [smem:[#allocation24_spill]]  ;;  %s477_s24 = scalar_lea.vmem [#allocation16], %s3973_s1 }
  0xcc   : > { %v513_v12 = vpack.c.bf16 %v512_v10, %v511_v9  ;;  %v504_v20 = vld [vmem:[#allocation2 + $0x7] sm:$0xff]  ;;  %v505_v21 = vld [vmem:[#allocation2 + $0xf] sm:$0xff]  ;;  %1237 = vmatpush1.bf16.msra.mxu1 %v4580_v23  ;;  %s3840_s12 = sshll.u32 %s477_s24, 4  ;;  %s4338_s27 = sshll.u32 %s5386_s23, 8  ;;  %s5735_s12 = int_to_ptr.vmem [resolvable:$true] %s3840_s12 }
  0xcd   : > { %v506_v24 = vpack.c.bf16 %v505_v21, %v504_v20  ;;  %1238 = vmatprep.subr.bf16.mxu1 %v4584_v25  ;;  %v651_v34 = vld [vmem:[#allocation2 + $0x9] sm:$0xff]  ;;  %v652_v35 = vld [vmem:[#allocation2 + $0x11] sm:$0xff]  ;;  %s5824_s15 = sld [smem:[#allocation25_spill]]  ;;  %s3827_s1 = scalar_lea.sflag [#allocation7], %s5611_s11 }
  0xce   : > { %3984 = vmatmul.mubr.msk.bf16.vlgmr.msra.gmra.mrb[0].mxu0 %vm479_vm0, %v513_v12  ;;  %v653_v37 = vpack.c.bf16 %v652_v35, %v651_v34  ;;  %v4608_v43 = vld [vmem:[#allocation10 + $0x74] ss:$8 sps:$4 sm:$0xff]   ;;  %v4571_v44 = vld [vmem:[#allocation10 + $0x124] ss:$8 sps:$4 sm:$0xff]   ;;  %v4610_v45 = vld [vmem:[#allocation10 + $0x70] ss:$8 sps:$4 sm:$0xff]  }
  0xcf   : > { %609 = vmatpush1.bf16.msra.mxu0 %v4548_v11  ;;  %640 = vmatprep.mubr.bf16.mxu0 %v5300_v0  ;;  %v4614_v46 = vld [vmem:[#allocation10 + $0x84] ss:$8 sps:$4 sm:$0xff]   ;;  %v4569_v47 = vld [vmem:[#allocation10 + $0x120] ss:$8 sps:$4 sm:$0xff]   ;;  %v4577_v48 = vld [vmem:[#allocation10 + $0x134] ss:$8 sps:$4 sm:$0xff]  }
  0xd0   : > { %610 = vmatprep.subr.bf16.mxu0 %v4553_v13  ;;  %1239 = vmatpush1.bf16.msra.mxu1 %v4586_v28  ;;  %v4616_v49 = vld [vmem:[#allocation10 + $0x80] ss:$8 sps:$4 sm:$0xff]   ;;  %v4620_v50 = vld [vmem:[#allocation10 + $0x94] ss:$8 sps:$4 sm:$0xff]   ;;  %v4575_v51 = vld [vmem:[#allocation10 + $0x130] ss:$8 sps:$4 sm:$0xff]  }
  0xd1   : > { %1240 = vmatprep.subr.bf16.mxu1 %v4590_v29  ;;  %v4583_v52 = vld [vmem:[#allocation10 + $0x144] ss:$8 sps:$4 sm:$0xff]   ;;  %v4622_v53 = vld [vmem:[#allocation10 + $0x90] ss:$8 sps:$4 sm:$0xff]   ;;  %v4581_v54 = vld [vmem:[#allocation10 + $0x140] ss:$8 sps:$4 sm:$0xff]  }
  0xd2   : > { %v4589_v55 = vld [vmem:[#allocation10 + $0x154] ss:$8 sps:$4 sm:$0xff]   ;;  %v4587_v56 = vld [vmem:[#allocation10 + $0x150] ss:$8 sps:$4 sm:$0xff]   ;;  %v4595_v57 = vld [vmem:[#allocation10 + $0x164] ss:$8 sps:$4 sm:$0xff]  }
  0xd3   : > { %611 = vmatpush1.bf16.msra.mxu0 %v4551_v16  ;;  %v4593_v58 = vld [vmem:[#allocation10 + $0x160] ss:$8 sps:$4 sm:$0xff]   ;;  %v4601_v59 = vld [vmem:[#allocation10 + $0x174] ss:$8 sps:$4 sm:$0xff]   ;;  %v4599_v60 = vld [vmem:[#allocation10 + $0x170] ss:$8 sps:$4 sm:$0xff]   ;;  %s5740_s26 = scalar_lea.hbm %s5824_s15, %s4338_s27 }
  0xd4   : > { %682 = vmatprep.subr.bf16.mxu0 %v4556_v17  ;;  %1241 = vmatpush1.bf16.msra.mxu1 %v4592_v32  ;;  %v4607_v61 = vld [vmem:[#allocation10 + $0x184] ss:$8 sps:$4 sm:$0xff]   ;;  %v4605_v62 = vld [vmem:[#allocation10 + $0x180] ss:$8 sps:$4 sm:$0xff]   ;;  %v4613_v63 = vld [vmem:[#allocation10 + $0x194] ss:$8 sps:$4 sm:$0xff]  }
  0xd5   : > { %1242 = vmatprep.subr.bf16.mxu1 %v4596_v33  ;;  %v4619_v1 = vld [vmem:[#allocation10 + $0x1a4] ss:$8 sps:$4 sm:$0xff]   ;;  %v4617_v2 = vld [vmem:[#allocation10 + $0x1a0] ss:$8 sps:$4 sm:$0xff]   ;;  %v4625_v3 = vld [vmem:[#allocation10 + $0x1b4] ss:$8 sps:$4 sm:$0xff]  }
  0xd6   : > { %v4623_v4 = vld [vmem:[#allocation10 + $0x1b0] ss:$8 sps:$4 sm:$0xff]   ;;  %v4631_v5 = vld [vmem:[#allocation10 + $0x1c4] ss:$8 sps:$4 sm:$0xff]   ;;  %v4629_v6 = vld [vmem:[#allocation10 + $0x1c0] ss:$8 sps:$4 sm:$0xff]  }
  0xd7   : > { %v4637_v7 = vld [vmem:[#allocation10 + $0x1d4] ss:$8 sps:$4 sm:$0xff]   ;;  %v4635_v8 = vld [vmem:[#allocation10 + $0x1d0] ss:$8 sps:$4 sm:$0xff]   ;;  %v4626_v9 = vld [vmem:[#allocation10 + $0xa4] ss:$8 sps:$4 sm:$0xff]  }
  0xd8   : > { %1243 = vmatpush1.bf16.msra.mxu1 %v4598_v36  ;;  %v4628_v10 = vld [vmem:[#allocation10 + $0xa0] ss:$8 sps:$4 sm:$0xff]   ;;  %v4643_v11 = vld [vmem:[#allocation10 + $0x1e4] ss:$8 sps:$4 sm:$0xff]   ;;  %v4632_v13 = vld [vmem:[#allocation10 + $0xb4] ss:$8 sps:$4 sm:$0xff]  }
  0xd9   : > { %1244 = vmatprep.subr.bf16.mxu1 %v4602_v38  ;;  %v4641_v12 = vld [vmem:[#allocation10 + $0x1e0] ss:$8 sps:$4 sm:$0xff]   ;;  %v4634_v14 = vld [vmem:[#allocation10 + $0xb0] ss:$8 sps:$4 sm:$0xff]   ;;  %v4649_v15 = vld [vmem:[#allocation10 + $0x1f4] ss:$8 sps:$4 sm:$0xff]  }
  0xda   : > { %3989 = vmatmul.mubr.msk.bf16.vlgmr.msra.gmra.mrb[0].mxu0 %vm479_vm0, %v506_v24  ;;  %v4647_v16 = vld [vmem:[#allocation10 + $0x1f0] ss:$8 sps:$4 sm:$0xff]   ;;  %v4638_v17 = vld [vmem:[#allocation10 + $0xc4] ss:$8 sps:$4 sm:$0xff]   ;;  %v4640_v18 = vld [vmem:[#allocation10 + $0xc0] ss:$8 sps:$4 sm:$0xff]  }
  0xdb   : > { %683 = vmatpush1.bf16.msra.mxu0 %v4554_v26  ;;  %714 = vmatprep.mubr.bf16.mxu0 %v5300_v0  ;;  %v4611_v0 = vld [vmem:[#allocation10 + $0x190] ss:$8 sps:$4 sm:$0xff]   ;;  %v4644_v19 = vld [vmem:[#allocation10 + $0xd4] ss:$8 sps:$4 sm:$0xff]   ;;  %v4650_v21 = vld [vmem:[#allocation10 + $0xe4] ss:$8 sps:$4 sm:$0xff]   ;;  %v731_v26 = vlaneseq }
  0xdc   : > { %684 = vmatprep.subr.bf16.mxu0 %v4559_v27  ;;  %1245 = vmatpush1.bf16.msra.mxu1 %v4604_v41  ;;  %v4646_v20 = vld [vmem:[#allocation10 + $0xd0] ss:$8 sps:$4 sm:$0xff]   ;;  %v4652_v22 = vld [vmem:[#allocation10 + $0xe0] ss:$8 sps:$4 sm:$0xff]   ;;  %v4653_v23 = vld [vmem:[#allocation10 + $0xf4] ss:$8 sps:$4 sm:$0xff]  }
  0xdd   : > { %1246 = vmatprep.subr.bf16.mxu1 %v4608_v43  ;;  %v4655_v24 = vld [vmem:[#allocation10 + $0xf0] ss:$8 sps:$4 sm:$0xff]   ;;  %v4658_v25 = vld [vmem:[#allocation10 + $0x204] ss:$8 sps:$4 sm:$0xff]   ;;  %v732_v27 = vshrl.u32 %v731_v26, 7  ;;  %s5210_s22 = scalar_lea.vmem %s5735_s12, 256 }
  0xde   : > { %v729_v29 = vld [vmem:[%s5786_s2] sm:$0x3]  ;;  %v4659_v26 = vld [vmem:[#allocation10 + $0x210] ss:$8 sps:$4 sm:$0xff]   ;;  %p5211_p7 = scmp.ne.s32.totalorder %s5735_s12, %s5210_s22  ;;  %p5825_p4 = scmp.ne.s32.totalorder %s5811_s14, 0 }
  0xdf   : > { %685 = vmatpush1.bf16.msra.mxu0 %v4557_v30  ;;  %v5649_v28 = vsub.s32 0, %v732_v27  ;;  %v5654_v30 = vsub.s32 1, %v732_v27  ;;  %v4664_v27 = vld [vmem:[#allocation10 + $0x224] ss:$8 sps:$4 sm:$0xff]   ;;  %s5302_s23 = smov [#allocation16]  }
  0xe0   : > { %992 = vmatprep.subr.bf16.mxu0 %v4562_v31  ;;  %1247 = vmatpush1.bf16.msra.mxu1 %v4610_v45  ;;  %v754_v45 = vld [vmem:[#allocation3 + $0x8] sm:$0x80]  ;;  %p5212_p12 = pnand %p5211_p7, %p5825_p4 }
  0xe1   : > { %1248 = vmatprep.subr.bf16.mxu1 %v4614_v46  ;;  %v734_v31 = vrot.slane %v729_v29, %v5649_v28  ;;  %v738_v32 = vrot.slane %v729_v29, %v5654_v30  ;;  %v4662_v29 = vld [vmem:[#allocation10 + $0x220] ss:$8 sps:$4 sm:$0xff]  }
  0xe2   : > { %p5213_p1 = pneg %p5212_p12 }
  0xe4   : > { %1249 = vmatpush1.bf16.msra.mxu1 %v4616_v49 }
  0xe5   : > { %1250 = vmatprep.subr.bf16.mxu1 %v4620_v50  ;;  %v1280_v50 = vld [vmem:[#allocation3 + $0x38] sm:$0x1] }
  0xe6   : > { %3994 = vmatmul.mubr.msk.bf16.vlgmr.msra.gmra.mrb[0].mxu0 %vm479_vm0, %v653_v37 }
  0xe7   : > { %993 = vmatpush1.bf16.msra.mxu0 %v4560_v39 }
  0xe8   : > { %994 = vmatprep.subr.bf16.mxu0 %v4565_v40  ;;  %1251 = vmatpush1.bf16.msra.mxu1 %v4622_v53 }
  0xe9   : > { %1252 = vmatprep.subr.bf16.mxu1 %v4626_v9 }
  0xeb   : > { %995 = vmatpush1.bf16.msra.mxu0 %v4563_v42 }
  0xec   : > { %996 = vmatprep.subr.bf16.mxu0 %v4571_v44  ;;  %1253 = vmatpush1.bf16.msra.mxu1 %v4628_v10 }
  0xed   : > { %1254 = vmatprep.subr.bf16.mxu1 %v4632_v13 }
  0xef   : > { %997 = vmatpush1.bf16.msra.mxu0 %v4569_v47 }
  0xf0   : > { %998 = vmatprep.subr.bf16.mxu0 %v4577_v48  ;;  %1255 = vmatpush1.bf16.msra.mxu1 %v4634_v14  ;;  %v753_v48 = vld [vmem:[#allocation3] sm:$0x80] }
  0xf1   : > { %1256 = vmatprep.subr.bf16.mxu1 %v4638_v17 }
  0xf3   : > { %999 = vmatpush1.bf16.msra.mxu0 %v4575_v51 }
  0xf4   : > { %1000 = vmatprep.subr.bf16.mxu0 %v4583_v52  ;;  %1257 = vmatpush1.bf16.msra.mxu1 %v4640_v18 }
  0xf5   : > { %1258 = vmatprep.subr.bf16.mxu1 %v4644_v19 }
  0xf7   : > { %1001 = vmatpush1.bf16.msra.mxu0 %v4581_v54  ;;  %v1284_v54 = vpack.c.bf16 %v1280_v50, %v1280_v50  ;;  %v4694_v50 = vld [vmem:[#allocation10 + $0x2c4] ss:$8 sps:$4 sm:$0xff]  }
  0xf8   : > { %1002 = vmatprep.subr.bf16.mxu0 %v4589_v55  ;;  %1259 = vmatpush1.bf16.msra.mxu1 %v4646_v20  ;;  %v4656_v20 = vld [vmem:[#allocation10 + $0x200] ss:$8 sps:$4 sm:$0xff]  }
  0xf9   : > { %1260 = vmatprep.subr.bf16.mxu1 %v4650_v21 }
  0xfb   : > { %1003 = vmatpush1.bf16.msra.mxu0 %v4587_v56 }
  0xfc   : > { %1004 = vmatprep.subr.bf16.mxu0 %v4595_v57  ;;  %1261 = vmatpush1.bf16.msra.mxu1 %v4652_v22 }
  0xfd   : > { %1262 = vmatprep.subr.bf16.mxu1 %v4653_v23  ;;  %v4661_v23 = vld [vmem:[#allocation10 + $0x214] ss:$8 sps:$4 sm:$0xff]  }
  0xff   : > { %1005 = vmatpush1.bf16.msra.mxu0 %v4593_v58 }
 0x100   : > { %1006 = vmatprep.subr.bf16.mxu0 %v4601_v59  ;;  %1263 = vmatpush1.bf16.msra.mxu1 %v4655_v24 }
 0x101   : > { %1505 = vmatprep.subr.bf16.mxu1 %v4658_v25 }
 0x103   : > { %1007 = vmatpush1.bf16.msra.mxu0 %v4599_v60 }
 0x104   : > { %1008 = vmatprep.subr.bf16.mxu0 %v4607_v61 }
 0x107   : > { %1009 = vmatpush1.bf16.msra.mxu0 %v4605_v62 }
 0x108   : > { %1010 = vmatprep.subr.bf16.mxu0 %v4613_v63 }
 0x10b   : > { %1011 = vmatpush1.bf16.msra.mxu0 %v4611_v0 }
 0x10c   : > { %1012 = vmatprep.subr.bf16.mxu0 %v4619_v1 }
 0x10f   : > { %1013 = vmatpush1.bf16.msra.mxu0 %v4617_v2 }
 0x110   : > { %1014 = vmatprep.subr.bf16.mxu0 %v4625_v3  ;;  %v1339_v3 = vshll.u32 %v1284_v54, 16 }
 0x112   : > { %v1341_v19 = vrot.slane %v1339_v3, 1 }
 0x113   : > { %1015 = vmatpush1.bf16.msra.mxu0 %v4623_v4 }
 0x114   : > { %1016 = vmatprep.subr.bf16.mxu0 %v4631_v5 }
 0x117   : > { %1017 = vmatpush1.bf16.msra.mxu0 %v4629_v6 }
 0x118   : > { %1018 = vmatprep.subr.bf16.mxu0 %v4637_v7 }
 0x11b   : > { %1019 = vmatpush1.bf16.msra.mxu0 %v4635_v8 }
 0x11c   : > { %1020 = vmatprep.subr.bf16.mxu0 %v4643_v11 }
 0x11f   : > { %1021 = vmatpush1.bf16.msra.mxu0 %v4641_v12 }
 0x120   : > { %1022 = vmatprep.subr.bf16.mxu0 %v4649_v15 }
 0x123   : > { %1023 = vmatpush1.bf16.msra.mxu0 %v4647_v16 }
 0x1b9   : > { %v716_v33 = vpop.f32.mrb[0].mxu0 }
 0x1ba   : > { %v741_v34 = vadd.f32 %v734_v31, %v716_v33  ;;  %v718_v35 = vpop.f32.mrb[1].mxu0  ;;  %v4670_v33 = vld [vmem:[#allocation10 + $0x244] ss:$8 sps:$4 sm:$0xff]  }
 0x1bb   : > { %v742_v36 = vadd.f32 %v738_v32, %v718_v35  ;;  %v720_v37 = vpop.f32.mrb[2].mxu0  ;;  %v4673_v35 = vld [vmem:[#allocation10 + $0x254] ss:$8 sps:$4 sm:$0xff]  }
 0x1bc   : > { %v745_v38 = vmax.f32 %v741_v34, 0.0  ;;  %v743_v39 = vadd.f32 %v734_v31, %v720_v37  ;;  %v722_v40 = vpop.f32.mrb[3].mxu0  ;;  %v4667_v31 = vld [vmem:[#allocation10 + $0x234] ss:$8 sps:$4 sm:$0xff]   ;;  %v4668_v34 = vld [vmem:[#allocation10 + $0x240] ss:$8 sps:$4 sm:$0xff]  }
 0x1bd   : > { %v746_v41 = vmax.f32 %v742_v36, 0.0  ;;  %v744_v42 = vadd.f32 %v738_v32, %v722_v40  ;;  %v4665_v32 = vld [vmem:[#allocation10 + $0x230] ss:$8 sps:$4 sm:$0xff]   ;;  %v4676_v37 = vld [vmem:[#allocation10 + $0x264] ss:$8 sps:$4 sm:$0xff]  }
 0x1be   : > { %749 = vst [vmem:[#allocation3 + $0x10] sm:$0xff] %v745_v38  ;;  %v5658_v43 = vmax.f32 %v743_v39, 0.0  ;;  %v759_v51 = vpack.c.bf16 %v745_v38, %v753_v48  ;;  %v4671_v36 = vld [vmem:[#allocation10 + $0x250] ss:$8 sps:$4 sm:$0xff]   ;;  %v4679_v39 = vld [vmem:[#allocation10 + $0x274] ss:$8 sps:$4 sm:$0xff]  }
 0x1bf   : > { %750 = vst [vmem:[#allocation3 + $0x18] sm:$0xff] %v746_v41  ;;  %v748_v44 = vmax.f32 %v744_v42, 0.0  ;;  %v760_v49 = vpack.c.bf16 %v746_v41, %v754_v45  ;;  %v4677_v40 = vld [vmem:[#allocation10 + $0x270] ss:$8 sps:$4 sm:$0xff]   ;;  %v4680_v42 = vld [vmem:[#allocation10 + $0x280] ss:$8 sps:$4 sm:$0xff]  }
 0x1c0   : > { %751 = vst [vmem:[#allocation3 + $0x20] sm:$0xff] %v5658_v43  ;;  %v797_v46 = vpack.c.bf16 %v5658_v43, %v745_v38  ;;  %v1037_v60 = vshrl.u32 %v759_v51, 16  ;;  %v1040_v61 = vshll.u32 %v759_v51, 16  ;;  %v4674_v38 = vld [vmem:[#allocation10 + $0x260] ss:$8 sps:$4 sm:$0xff]  }
 0x1c1   : > { %752 = vst [vmem:[#allocation3 + $0x28] sm:$0xff] %v748_v44  ;;  %v798_v47 = vpack.c.bf16 %v748_v44, %v746_v41  ;;  %v1054_v52 = vshrl.u32 %v760_v49, 16  ;;  %v1057_v55 = vshll.u32 %v760_v49, 16  ;;  %v4682_v41 = vld [vmem:[#allocation10 + $0x284] ss:$8 sps:$4 sm:$0xff]  }
 0x1c2   : > { %v1039_v8 = vrot.slane %v1037_v60, 3  ;;  %v1042_v9 = vrot.slane %v1040_v61, 4  ;;  %v4683_v45 = vld [vmem:[#allocation10 + $0x290] ss:$8 sps:$4 sm:$0xff]   ;;  %v4691_v48 = vld [vmem:[#allocation10 + $0x2b4] ss:$8 sps:$4 sm:$0xff]  }
 0x1c3   : > { %1024 = vmatprep.mubr.bf16.mxu0 %v798_v47  ;;  %v1056_v0 = vrot.slane %v1054_v52, 3  ;;  %v1059_v4 = vrot.slane %v1057_v55, 4  ;;  %v4686_v47 = vld [vmem:[#allocation10 + $0x2a0] ss:$8 sps:$4 sm:$0xff]   ;;  %v4689_v49 = vld [vmem:[#allocation10 + $0x2b0] ss:$8 sps:$4 sm:$0xff]  }
 0x1c4   : > { %1025 = vmatmul.mubr.bf16.vlgmr.msra.gmra.mrb[4].mxu0 %v797_v46  ;;  %v1043_v21 = vor.u32 %v1042_v9, %v1039_v8  ;;  %v4688_v46 = vld [vmem:[#allocation10 + $0x2a4] ss:$8 sps:$4 sm:$0xff]   ;;  %v4692_v52 = vld [vmem:[#allocation10 + $0x2c0] ss:$8 sps:$4 sm:$0xff]   ;;  %v1279_v55 = vld [vmem:[#allocation3 + $0x30] sm:$0x1] }
 0x1c5   : > { %v1060_v16 = vor.u32 %v1059_v4, %v1056_v0  ;;  %v1275_v51 = vld [vmem:[#allocation3 + $0x10] sm:$0xfe]  ;;  %v4698_v60 = vld [vmem:[#allocation10 + $0x2e0] ss:$8 sps:$4 sm:$0xff]   ;;  %v4712_v8 = vld [vmem:[#allocation11 + $0x124] ss:$8 sps:$4 sm:$0xff]  }
 0x1c6   : > { %v1276_v53 = vld [vmem:[#allocation3 + $0x18] sm:$0xfe]  ;;  %v1281_v54 = vpack.c.bf16 %v5658_v43, %v1275_v51  ;;  %v4704_v4 = vld [vmem:[#allocation11 + $0x100] ss:$8 sps:$4 sm:$0xff]  }
 0x1c7   : > { %v757_v56 = vld [vmem:[#allocation3 + $0x20] sm:$0x7f]  ;;  %v1282_v57 = vpack.c.bf16 %v748_v44, %v1276_v53  ;;  %v4685_v44 = vld [vmem:[#allocation10 + $0x294] ss:$8 sps:$4 sm:$0xff]   ;;  %v4701_v0 = vld [vmem:[#allocation10 + $0x2f0] ss:$8 sps:$4 sm:$0xff]  }
 0x1c8   : > { %v758_v58 = vld [vmem:[#allocation3 + $0x28] sm:$0x7f]  ;;  %v761_v59 = vpack.c.bf16 %v757_v56, %v757_v56  ;;  %v4697_v53 = vld [vmem:[#allocation10 + $0x2d4] ss:$8 sps:$4 sm:$0xff]   ;;  %v4695_v56 = vld [vmem:[#allocation10 + $0x2d0] ss:$8 sps:$4 sm:$0xff]  }
 0x1c9   : > { %v762_v62 = vpack.c.bf16 %v758_v58, %v758_v58  ;;  %v1334_v63 = vshll.u32 %v1282_v57, 16  ;;  %v1332_v14 = vshrl.u32 %v1282_v57, 16  ;;  %v4700_v57 = vld [vmem:[#allocation10 + $0x2e4] ss:$8 sps:$4 sm:$0xff]   ;;  %v1283_v58 = vpack.c.bf16 %v1279_v55, %v1279_v55  ;;  %v4703_v61 = vld [vmem:[#allocation10 + $0x2f4] ss:$8 sps:$4 sm:$0xff]  }
 0x1ca   : > { %v1045_v1 = vshrl.u32 %v761_v59, 16  ;;  %v1048_v2 = vshll.u32 %v761_v59, 16  ;;  %v1322_v59 = vshll.u32 %v1281_v54, 16  ;;  %v4710_v9 = vld [vmem:[#allocation11 + $0x120] ss:$8 sps:$4 sm:$0xff]  }
 0x1cb   : > { %v1062_v5 = vshrl.u32 %v762_v62, 16  ;;  %v1065_v6 = vshll.u32 %v762_v62, 16  ;;  %v1336_v7 = vrot.slane %v1334_v63, 1  ;;  %v1327_v63 = vshll.u32 %v1283_v58, 16 }
 0x1cc   : > { %v1047_v10 = vrot.slane %v1045_v1, 3  ;;  %v1050_v11 = vrot.slane %v1048_v2, 4  ;;  %v1324_v62 = vrot.slane %v1322_v59, 1  ;;  %v1320_v1 = vshrl.u32 %v1281_v54, 16 }
 0x1cd   : > { %v1064_v12 = vrot.slane %v1062_v5, 3  ;;  %v1067_v13 = vrot.slane %v1065_v6, 4  ;;  %v1337_v18 = vor.u32 %v1336_v7, %v1332_v14  ;;  %v1329_v3 = vrot.slane %v1327_v63, 1  ;;  %v4706_v5 = vld [vmem:[#allocation11 + $0x104] ss:$8 sps:$4 sm:$0xff]  }
 0x1ce   : > { %v1051_v15 = vor.u32 %v1050_v11, %v1047_v10  ;;  %v1325_v2 = vor.u32 %v1324_v62, %v1320_v1  ;;  %v4709_v6 = vld [vmem:[#allocation11 + $0x114] ss:$8 sps:$4 sm:$0xff]   ;;  %1815 = vmatprep.subr.bf16.mxu0 %v4706_v5  ;;  %v4707_v7 = vld [vmem:[#allocation11 + $0x110] ss:$8 sps:$4 sm:$0xff]   ;;  %v1577_v63 = vld [vmem:[#allocation4 + $0x8] sm:$0x80] }
 0x1cf   : > { %v1068_v17 = vor.u32 %v1067_v13, %v1064_v12  ;;  %v1342_v25 = vsel %vm1318_vm2, %v1337_v18, %v1341_v19  ;;  %1816 = vmatpush1.bf16.msra.mxu0 %v4704_v4  ;;  %v4715_v10 = vld [vmem:[#allocation11 + $0x134] ss:$8 sps:$4 sm:$0xff]   ;;  %v4713_v11 = vld [vmem:[#allocation11 + $0x130] ss:$8 sps:$4 sm:$0xff]   ;;  %v4718_v12 = vld [vmem:[#allocation11 + $0x144] ss:$8 sps:$4 sm:$0xff]  }
 0x1d0   : > { %v1052_v24 = vsel %vm1035_vm1, %v1043_v21, %v1051_v15  ;;  %v1330_v43 = vsel %vm1318_vm2, %v1325_v2, %v1329_v3  ;;  %1817 = vmatprep.subr.bf16.mxu0 %v4709_v6  ;;  %v4716_v13 = vld [vmem:[#allocation11 + $0x140] ss:$8 sps:$4 sm:$0xff]   ;;  %v4721_v14 = vld [vmem:[#allocation11 + $0x154] ss:$8 sps:$4 sm:$0xff]   ;;  %v4719_v15 = vld [vmem:[#allocation11 + $0x150] ss:$8 sps:$4 sm:$0xff]  }
 0x1d1   : > { %v1069_v22 = vsel %vm1035_vm1, %v1060_v16, %v1068_v17  ;;  %v4724_v16 = vld [vmem:[#allocation11 + $0x164] ss:$8 sps:$4 sm:$0xff]   ;;  %v4722_v17 = vld [vmem:[#allocation11 + $0x160] ss:$8 sps:$4 sm:$0xff]   ;;  %v4727_v18 = vld [vmem:[#allocation11 + $0x174] ss:$8 sps:$4 sm:$0xff]  }
 0x1d2   : > { %1264 = vmatprep.mubr.bf16.mxu1 %v1069_v22  ;;  %v4725_v19 = vld [vmem:[#allocation11 + $0x170] ss:$8 sps:$4 sm:$0xff]   ;;  %v4728_v21 = vld [vmem:[#allocation11 + $0x180] ss:$8 sps:$4 sm:$0xff]   ;;  %v4733_v22 = vld [vmem:[#allocation11 + $0x194] ss:$8 sps:$4 sm:$0xff]  }
 0x1d3   : > { %1265 = vmatmul.mubr.bf16.vlgmr.msra.gmra.mrb[0].mxu1 %v1052_v24  ;;  %1818 = vmatpush1.bf16.msra.mxu0 %v4707_v7  ;;  %v4736_v24 = vld [vmem:[#allocation11 + $0x1a4] ss:$8 sps:$4 sm:$0xff]   ;;  %v4752_v2 = vld [vmem:[#allocation11] ss:$8 sps:$4 sm:$0xff]   ;;  %v4757_v3 = vld [vmem:[#allocation11 + $0x14] ss:$8 sps:$4 sm:$0xff]  }
 0x1d4   : > { %1506 = vmatpush1.bf16.msra.mxu1 %v4656_v20  ;;  %1537 = vmatprep.mubr.bf16.mxu1 %v1342_v25  ;;  %v4730_v20 = vld [vmem:[#allocation11 + $0x184] ss:$8 sps:$4 sm:$0xff]   ;;  %v4734_v25 = vld [vmem:[#allocation11 + $0x1a0] ss:$8 sps:$4 sm:$0xff]   ;;  %v4755_v6 = vld [vmem:[#allocation11 + $0x10] ss:$8 sps:$4 sm:$0xff]  }
 0x1d5   : > { %1507 = vmatprep.subr.bf16.mxu1 %v4661_v23  ;;  %1819 = vmatprep.subr.bf16.mxu0 %v4712_v8  ;;  %v4731_v23 = vld [vmem:[#allocation11 + $0x190] ss:$8 sps:$4 sm:$0xff]   ;;  %v4848_v4 = vld [vmem:[#allocation13 + $0x100] ss:$8 sps:$4 sm:$0xff]   ;;  %v4850_v5 = vld [vmem:[#allocation13 + $0x104] ss:$8 sps:$4 sm:$0xff]  }
 0x1d6   : > { %v4853_v7 = vld [vmem:[#allocation13 + $0x114] ss:$8 sps:$4 sm:$0xff]   ;;  %v4760_v8 = vld [vmem:[#allocation11 + $0x24] ss:$8 sps:$4 sm:$0xff]  }
 0x1d7   : > { %1820 = vmatpush1.bf16.msra.mxu0 %v4710_v9 }
 0x1d8   : > { %1508 = vmatpush1.bf16.msra.mxu1 %v4659_v26  ;;  %1821 = vmatprep.subr.bf16.mxu0 %v4715_v10  ;;  %v4739_v26 = vld [vmem:[#allocation11 + $0x1b4] ss:$8 sps:$4 sm:$0xff]  }
 0x1d9   : > { %1509 = vmatprep.subr.bf16.mxu1 %v4664_v27  ;;  %v4737_v27 = vld [vmem:[#allocation11 + $0x1b0] ss:$8 sps:$4 sm:$0xff]  }
 0x1db   : > { %1822 = vmatpush1.bf16.msra.mxu0 %v4713_v11  ;;  %v4851_v11 = vld [vmem:[#allocation13 + $0x110] ss:$8 sps:$4 sm:$0xff]  }
 0x1dc   : > { %1510 = vmatpush1.bf16.msra.mxu1 %v4662_v29  ;;  %1823 = vmatprep.subr.bf16.mxu0 %v4718_v12  ;;  %v4742_v29 = vld [vmem:[#allocation11 + $0x1c4] ss:$8 sps:$4 sm:$0xff]  }
 0x1dd   : > { %1511 = vmatprep.subr.bf16.mxu1 %v4667_v31  ;;  %v4740_v31 = vld [vmem:[#allocation11 + $0x1c0] ss:$8 sps:$4 sm:$0xff]  }
 0x1df   : > { %1824 = vmatpush1.bf16.msra.mxu0 %v4716_v13  ;;  %v4856_v13 = vld [vmem:[#allocation13 + $0x124] ss:$8 sps:$4 sm:$0xff]  }
 0x1e0   : > { %1512 = vmatpush1.bf16.msra.mxu1 %v4665_v32  ;;  %1825 = vmatprep.subr.bf16.mxu0 %v4721_v14  ;;  %v4745_v32 = vld [vmem:[#allocation11 + $0x1d4] ss:$8 sps:$4 sm:$0xff]  }
 0x1e1   : > { %1513 = vmatprep.subr.bf16.mxu1 %v4670_v33  ;;  %v4743_v33 = vld [vmem:[#allocation11 + $0x1d0] ss:$8 sps:$4 sm:$0xff]  }
 0x1e3   : > { %1826 = vmatpush1.bf16.msra.mxu0 %v4719_v15  ;;  %v4758_v15 = vld [vmem:[#allocation11 + $0x20] ss:$8 sps:$4 sm:$0xff]  }
 0x1e4   : > { %1514 = vmatpush1.bf16.msra.mxu1 %v4668_v34  ;;  %1827 = vmatprep.subr.bf16.mxu0 %v4724_v16  ;;  %v4748_v34 = vld [vmem:[#allocation11 + $0x1e4] ss:$8 sps:$4 sm:$0xff]   ;;  %v4763_v16 = vld [vmem:[#allocation11 + $0x34] ss:$8 sps:$4 sm:$0xff]  }
 0x1e5   : > { %1515 = vmatprep.subr.bf16.mxu1 %v4673_v35  ;;  %v4746_v35 = vld [vmem:[#allocation11 + $0x1e0] ss:$8 sps:$4 sm:$0xff]  }
 0x1e7   : > { %1828 = vmatpush1.bf16.msra.mxu0 %v4722_v17 }
 0x1e8   : > { %1516 = vmatpush1.bf16.msra.mxu1 %v4671_v36  ;;  %1829 = vmatprep.subr.bf16.mxu0 %v4727_v18  ;;  %v4751_v36 = vld [vmem:[#allocation11 + $0x1f4] ss:$8 sps:$4 sm:$0xff]  }
 0x1e9   : > { %1517 = vmatprep.subr.bf16.mxu1 %v4676_v37  ;;  %v4749_v37 = vld [vmem:[#allocation11 + $0x1f0] ss:$8 sps:$4 sm:$0xff]  }
 0x1eb   : > { %1830 = vmatpush1.bf16.msra.mxu0 %v4725_v19 }
 0x1ec   : > { %1518 = vmatpush1.bf16.msra.mxu1 %v4674_v38  ;;  %1831 = vmatprep.subr.bf16.mxu0 %v4730_v20  ;;  %v4754_v38 = vld [vmem:[#allocation11 + $0x4] ss:$8 sps:$4 sm:$0xff]  }
 0x1ed   : > { %1519 = vmatprep.subr.bf16.mxu1 %v4679_v39 }
 0x1ef   : > { %1832 = vmatpush1.bf16.msra.mxu0 %v4728_v21  ;;  %v4854_v21 = vld [vmem:[#allocation13 + $0x120] ss:$8 sps:$4 sm:$0xff]  }
 0x1f0   : > { %1520 = vmatpush1.bf16.msra.mxu1 %v4677_v40  ;;  %1833 = vmatprep.subr.bf16.mxu0 %v4733_v22  ;;  %v4859_v22 = vld [vmem:[#allocation13 + $0x134] ss:$8 sps:$4 sm:$0xff]  }
 0x1f1   : > { %1521 = vmatprep.subr.bf16.mxu1 %v4682_v41 }
 0x1f3   : > { %1834 = vmatpush1.bf16.msra.mxu0 %v4731_v23 }
 0x1f4   : > { %1522 = vmatpush1.bf16.msra.mxu1 %v4680_v42  ;;  %1835 = vmatprep.subr.bf16.mxu0 %v4736_v24 }
 0x1f5   : > { %1523 = vmatprep.subr.bf16.mxu1 %v4685_v44  ;;  %v1552_v44 = vld [vmem:[%s5788_s4] sm:$0x3] }
 0x1f7   : > { %1836 = vmatpush1.bf16.msra.mxu0 %v4734_v25  ;;  %v4761_v25 = vld [vmem:[#allocation11 + $0x30] ss:$8 sps:$4 sm:$0xff]  }
 0x1f8   : > { %1524 = vmatpush1.bf16.msra.mxu1 %v4683_v45  ;;  %1837 = vmatprep.subr.bf16.mxu0 %v4739_v26  ;;  %v1557_v45 = vrot.slane %v1552_v44, %v5649_v28  ;;  %v4766_v26 = vld [vmem:[#allocation11 + $0x44] ss:$8 sps:$4 sm:$0xff]  }
 0x1f9   : > { %1525 = vmatprep.subr.bf16.mxu1 %v4688_v46 }
 0x1fb   : > { %1838 = vmatpush1.bf16.msra.mxu0 %v4737_v27 }
 0x1fc   : > { %1526 = vmatpush1.bf16.msra.mxu1 %v4686_v47  ;;  %1839 = vmatprep.subr.bf16.mxu0 %v4742_v29  ;;  %v1561_v47 = vrot.slane %v1552_v44, %v5654_v30  ;;  %v4775_v44 = vld [vmem:[#allocation11 + $0x74] ss:$8 sps:$4 sm:$0xff]  }
 0x1fd   : > { %1527 = vmatprep.subr.bf16.mxu1 %v4691_v48 }
 0x1ff   : > { %1840 = vmatpush1.bf16.msra.mxu0 %v4740_v31  ;;  %v4857_v31 = vld [vmem:[#allocation13 + $0x130] ss:$8 sps:$4 sm:$0xff]  }
 0x200   : > { %1528 = vmatpush1.bf16.msra.mxu1 %v4689_v49  ;;  %1841 = vmatprep.subr.bf16.mxu0 %v4745_v32  ;;  %v4862_v32 = vld [vmem:[#allocation13 + $0x144] ss:$8 sps:$4 sm:$0xff]  }
 0x201   : > { %1529 = vmatprep.subr.bf16.mxu1 %v4694_v50 }
 0x203   : > { %1842 = vmatpush1.bf16.msra.mxu0 %v4743_v33 }
 0x204   : > { %1530 = vmatpush1.bf16.msra.mxu1 %v4692_v52  ;;  %1843 = vmatprep.subr.bf16.mxu0 %v4748_v34  ;;  %v4764_v34 = vld [vmem:[#allocation11 + $0x40] ss:$8 sps:$4 sm:$0xff]  }
 0x205   : > { %1531 = vmatprep.subr.bf16.mxu1 %v4697_v53 }
 0x207   : > { %1844 = vmatpush1.bf16.msra.mxu0 %v4746_v35  ;;  %v4769_v35 = vld [vmem:[#allocation11 + $0x54] ss:$8 sps:$4 sm:$0xff]  }
 0x208   : > { %1532 = vmatpush1.bf16.msra.mxu1 %v4695_v56  ;;  %1845 = vmatprep.subr.bf16.mxu0 %v4751_v36  ;;  %v4860_v36 = vld [vmem:[#allocation13 + $0x140] ss:$8 sps:$4 sm:$0xff]  }
 0x209   : > { %1533 = vmatprep.subr.bf16.mxu1 %v4700_v57 }
 0x20b   : > { %1846 = vmatpush1.bf16.msra.mxu0 %v4749_v37  ;;  %v4865_v37 = vld [vmem:[#allocation13 + $0x154] ss:$8 sps:$4 sm:$0xff]  }
 0x20c   : > { %1534 = vmatpush1.bf16.msra.mxu1 %v4698_v60  ;;  %2054 = vmatprep.subr.bf16.mxu0 %v4754_v38  ;;  %v4767_v38 = vld [vmem:[#allocation11 + $0x50] ss:$8 sps:$4 sm:$0xff]  }
 0x20d   : > { %1535 = vmatprep.subr.bf16.mxu1 %v4703_v61 }
 0x210   : > { %1536 = vmatpush1.bf16.msra.mxu1 %v4701_v0 }
 0x211   : > { %2636 = vmatprep.subr.bf16.mxu1 %v4850_v5  ;;  %v4788_v5 = vld [vmem:[#allocation11 + $0xc0] ss:$8 sps:$4 sm:$0xff]  }
 0x213   : > { %1538 = vmatmul.mubr.bf16.vlgmr.msra.gmra.mrb[0].mxu1 %v1330_v43 }
 0x214   : > { %2637 = vmatpush1.bf16.msra.mxu1 %v4848_v4 }
 0x215   : > { %2638 = vmatprep.subr.bf16.mxu1 %v4853_v7  ;;  %v1576_v7 = vld [vmem:[#allocation4] sm:$0x80] }
 0x218   : > { %2639 = vmatpush1.bf16.msra.mxu1 %v4851_v11 }
 0x219   : > { %2640 = vmatprep.subr.bf16.mxu1 %v4856_v13  ;;  %v2102_v13 = vld [vmem:[#allocation4 + $0x38] sm:$0x1] }
 0x21c   : > { %2641 = vmatpush1.bf16.msra.mxu1 %v4854_v21 }
 0x21d   : > { %2642 = vmatprep.subr.bf16.mxu1 %v4859_v22  ;;  %v4799_v22 = vld [vmem:[#allocation11 + $0xf4] ss:$8 sps:$4 sm:$0xff]  }
 0x220   : > { %2643 = vmatpush1.bf16.msra.mxu1 %v4857_v31 }
 0x221   : > { %2644 = vmatprep.subr.bf16.mxu1 %v4862_v32 }
 0x224   : > { %2645 = vmatpush1.bf16.msra.mxu1 %v4860_v36  ;;  %v4800_v36 = vld [vmem:[#allocation11 + $0x200] ss:$8 sps:$4 sm:$0xff]  }
 0x225   : > { %2646 = vmatprep.subr.bf16.mxu1 %v4865_v37  ;;  %v4805_v37 = vld [vmem:[#allocation11 + $0x214] ss:$8 sps:$4 sm:$0xff]  }
 0x297   : > { %v1026_v39 = vpop.f32.mrb[4].mxu0 }
 0x298   : > { %v1028_v40 = vpop.f32.mrb[5].mxu0 }
 0x299   : > { %v1030_v41 = vpop.f32.mrb[6].mxu0 }
 0x29a   : > { %v1032_v42 = vpop.f32.mrb[7].mxu0 }
 0x2e6   : > { %v1539_v46 = vpop.f32.mrb[0].mxu1 }
 0x2e7   : > { %v4405_v48 = vadd.f32 %v1539_v46, %v1026_v39  ;;  %v1541_v49 = vpop.f32.mrb[1].mxu1  ;;  %v4772_v39 = vld [vmem:[#allocation11 + $0x64] ss:$8 sps:$4 sm:$0xff]   ;;  %v4871_v46 = vld [vmem:[#allocation13 + $0x174] ss:$8 sps:$4 sm:$0xff]  }
 0x2e8   : > { %v4406_v50 = vadd.f32 %v1541_v49, %v1028_v40  ;;  %v1543_v51 = vpop.f32.mrb[2].mxu1  ;;  %v4863_v40 = vld [vmem:[#allocation13 + $0x150] ss:$8 sps:$4 sm:$0xff]  }
 0x2e9   : > { %v1564_v52 = vadd.f32 %v4405_v48, %v1557_v45  ;;  %v4407_v53 = vadd.f32 %v1543_v51, %v1030_v41  ;;  %v1545_v54 = vpop.f32.mrb[3].mxu1  ;;  %v4868_v41 = vld [vmem:[#allocation13 + $0x164] ss:$8 sps:$4 sm:$0xff]   ;;  %2647 = vmatpush1.bf16.msra.mxu1 %v4863_v40  ;;  %v4869_v49 = vld [vmem:[#allocation13 + $0x170] ss:$8 sps:$4 sm:$0xff]  }
 0x2ea   : > { %v1565_v55 = vadd.f32 %v4406_v50, %v1561_v47  ;;  %v4408_v56 = vadd.f32 %v1545_v54, %v1032_v42  ;;  %v4770_v42 = vld [vmem:[#allocation11 + $0x60] ss:$8 sps:$4 sm:$0xff]   ;;  %2648 = vmatprep.subr.bf16.mxu1 %v4868_v41  ;;  %v4778_v48 = vld [vmem:[#allocation11 + $0x84] ss:$8 sps:$4 sm:$0xff]   ;;  %v4877_v54 = vld [vmem:[#allocation13 + $0x194] ss:$8 sps:$4 sm:$0xff]  }
 0x2eb   : > { %v5672_v57 = vmax.f32 %v1564_v52, 0.0  ;;  %v1566_v58 = vadd.f32 %v4407_v53, %v1557_v45  ;;  %v4866_v45 = vld [vmem:[#allocation13 + $0x160] ss:$8 sps:$4 sm:$0xff]   ;;  %v4874_v50 = vld [vmem:[#allocation13 + $0x184] ss:$8 sps:$4 sm:$0xff]  }
 0x2ec   : > { %v1569_v59 = vmax.f32 %v1565_v55, 0.0  ;;  %v1567_v60 = vadd.f32 %v4408_v56, %v1561_v47  ;;  %v4773_v47 = vld [vmem:[#allocation11 + $0x70] ss:$8 sps:$4 sm:$0xff]   ;;  %v4776_v51 = vld [vmem:[#allocation11 + $0x80] ss:$8 sps:$4 sm:$0xff]  }
 0x2ed   : > { %1572 = vst [vmem:[#allocation4 + $0x10] sm:$0xff] %v5672_v57  ;;  %v5675_v61 = vmax.f32 %v1566_v58, 0.0  ;;  %2649 = vmatpush1.bf16.msra.mxu1 %v4866_v45  ;;  %v4781_v52 = vld [vmem:[#allocation11 + $0x94] ss:$8 sps:$4 sm:$0xff]   ;;  %v4872_v53 = vld [vmem:[#allocation13 + $0x180] ss:$8 sps:$4 sm:$0xff]   ;;  %v1582_v11 = vpack.c.bf16 %v5672_v57, %v1576_v7 }
 0x2ee   : > { %1573 = vst [vmem:[#allocation4 + $0x18] sm:$0xff] %v1569_v59  ;;  %v5677_v62 = vmax.f32 %v1567_v60, 0.0  ;;  %v1583_v43 = vpack.c.bf16 %v1569_v59, %v1577_v63  ;;  %2650 = vmatprep.subr.bf16.mxu1 %v4871_v46  ;;  %v4779_v55 = vld [vmem:[#allocation11 + $0x90] ss:$8 sps:$4 sm:$0xff]   ;;  %v4784_v56 = vld [vmem:[#allocation11 + $0xa4] ss:$8 sps:$4 sm:$0xff]  }
 0x2ef   : > { %1574 = vst [vmem:[#allocation4 + $0x20] sm:$0xff] %v5675_v61  ;;  %v1620_v0 = vpack.c.bf16 %v5675_v61, %v5672_v57  ;;  %v4875_v58 = vld [vmem:[#allocation13 + $0x190] ss:$8 sps:$4 sm:$0xff]   ;;  %v4782_v60 = vld [vmem:[#allocation11 + $0xa0] ss:$8 sps:$4 sm:$0xff]   ;;  %v1862_v21 = vshll.u32 %v1582_v11, 16 }
 0x2f0   : > { %1575 = vst [vmem:[#allocation4 + $0x28] sm:$0xff] %v5677_v62  ;;  %v1621_v1 = vpack.c.bf16 %v5677_v62, %v1569_v59  ;;  %v1876_v9 = vshrl.u32 %v1583_v43, 16  ;;  %v1879_v10 = vshll.u32 %v1583_v43, 16  ;;  %v4880_v59 = vld [vmem:[#allocation13 + $0x1a4] ss:$8 sps:$4 sm:$0xff]  }
 0x2f1   : > { %2651 = vmatpush1.bf16.msra.mxu1 %v4869_v49  ;;  %v4787_v63 = vld [vmem:[#allocation11 + $0xb4] ss:$8 sps:$4 sm:$0xff]   ;;  %v4881_v43 = vld [vmem:[#allocation13 + $0x1b0] ss:$8 sps:$4 sm:$0xff]   ;;  %v4808_v41 = vld [vmem:[#allocation11 + $0x224] ss:$8 sps:$4 sm:$0xff]  }
 0x2f2   : > { %1847 = vmatprep.mubr.bf16.mxu0 %v1621_v1  ;;  %v1878_v17 = vrot.slane %v1876_v9, 3  ;;  %v1881_v18 = vrot.slane %v1879_v10, 4  ;;  %2652 = vmatprep.subr.bf16.mxu1 %v4874_v50  ;;  %v4883_v1 = vld [vmem:[#allocation13 + $0x1b4] ss:$8 sps:$4 sm:$0xff]   ;;  %v4797_v57 = vld [vmem:[#allocation11 + $0xf0] ss:$8 sps:$4 sm:$0xff]  }
 0x2f3   : > { %1848 = vmatmul.mubr.bf16.vlgmr.msra.gmra.mrb[8].mxu0 %v1620_v0  ;;  %v4878_v0 = vld [vmem:[#allocation13 + $0x1a0] ss:$8 sps:$4 sm:$0xff]   ;;  %v4803_v40 = vld [vmem:[#allocation11 + $0x210] ss:$8 sps:$4 sm:$0xff]   ;;  %v4814_v46 = vld [vmem:[#allocation11 + $0x244] ss:$8 sps:$4 sm:$0xff]  }
 0x2f4   : > { %2055 = vmatpush1.bf16.msra.mxu0 %v4752_v2  ;;  %v1882_v27 = vor.u32 %v1881_v18, %v1878_v17  ;;  %v4785_v2 = vld [vmem:[#allocation11 + $0xb0] ss:$8 sps:$4 sm:$0xff]   ;;  %v2106_v17 = vpack.c.bf16 %v2102_v13, %v2102_v13  ;;  %v4820_v50 = vld [vmem:[#allocation11 + $0x264] ss:$8 sps:$4 sm:$0xff]  }
 0x2f5   : > { %2056 = vmatprep.subr.bf16.mxu0 %v4757_v3  ;;  %2653 = vmatpush1.bf16.msra.mxu1 %v4872_v53  ;;  %v4790_v3 = vld [vmem:[#allocation11 + $0xc4] ss:$8 sps:$4 sm:$0xff]   ;;  %v4809_v45 = vld [vmem:[#allocation11 + $0x230] ss:$8 sps:$4 sm:$0xff]  }
 0x2f6   : > { %2654 = vmatprep.subr.bf16.mxu1 %v4877_v54  ;;  %v1580_v4 = vld [vmem:[#allocation4 + $0x20] sm:$0x7f]  ;;  %v4815_v49 = vld [vmem:[#allocation11 + $0x250] ss:$8 sps:$4 sm:$0xff]  }
 0x2f7   : > { %v1581_v12 = vld [vmem:[#allocation4 + $0x28] sm:$0x7f]  ;;  %v1584_v9 = vpack.c.bf16 %v1580_v4, %v1580_v4  ;;  %v4821_v53 = vld [vmem:[#allocation11 + $0x270] ss:$8 sps:$4 sm:$0xff]  }
 0x2f8   : > { %2057 = vmatpush1.bf16.msra.mxu0 %v4755_v6  ;;  %v1585_v14 = vpack.c.bf16 %v1581_v12, %v1581_v12  ;;  %v2098_v6 = vld [vmem:[#allocation4 + $0x18] sm:$0xfe]  ;;  %v4826_v54 = vld [vmem:[#allocation11 + $0x284] ss:$8 sps:$4 sm:$0xff]  }
 0x2f9   : > { %2058 = vmatprep.subr.bf16.mxu0 %v4760_v8  ;;  %2655 = vmatpush1.bf16.msra.mxu1 %v4875_v58  ;;  %v4793_v8 = vld [vmem:[#allocation11 + $0xd4] ss:$8 sps:$4 sm:$0xff]   ;;  %v2104_v10 = vpack.c.bf16 %v5677_v62, %v2098_v6  ;;  %v4791_v12 = vld [vmem:[#allocation11 + $0xd0] ss:$8 sps:$4 sm:$0xff]   ;;  %v4844_v7 = vld [vmem:[#allocation11 + $0x2e4] ss:$8 sps:$4 sm:$0xff]  }
 0x2fa   : > { %v1884_v19 = vshrl.u32 %v1585_v14, 16  ;;  %v1887_v20 = vshll.u32 %v1585_v14, 16  ;;  %2656 = vmatprep.subr.bf16.mxu1 %v4880_v59  ;;  %v4796_v14 = vld [vmem:[#allocation11 + $0xe4] ss:$8 sps:$4 sm:$0xff]   ;;  %v4827_v58 = vld [vmem:[#allocation11 + $0x290] ss:$8 sps:$4 sm:$0xff]  }
 0x2fb   : > { %v2155_v18 = vshll.u32 %v2104_v10, 16  ;;  %v2153_v31 = vshrl.u32 %v2104_v10, 16  ;;  %v4832_v59 = vld [vmem:[#allocation11 + $0x2a4] ss:$8 sps:$4 sm:$0xff]   ;;  %v4839_v6 = vld [vmem:[#allocation11 + $0x2d0] ss:$8 sps:$4 sm:$0xff]  }
 0x2fc   : > { %v1886_v23 = vrot.slane %v1884_v19, 3  ;;  %v1889_v24 = vrot.slane %v1887_v20, 4  ;;  %2059 = vmatpush1.bf16.msra.mxu0 %v4758_v15  ;;  %v1867_v15 = vshrl.u32 %v1584_v9, 16  ;;  %v4794_v19 = vld [vmem:[#allocation11 + $0xe0] ss:$8 sps:$4 sm:$0xff]   ;;  %v1859_v20 = vshrl.u32 %v1582_v11, 16 }
 0x2fd   : > { %2060 = vmatprep.subr.bf16.mxu0 %v4763_v16  ;;  %2657 = vmatpush1.bf16.msra.mxu1 %v4878_v0  ;;  %v1870_v16 = vshll.u32 %v1584_v9, 16  ;;  %v2157_v62 = vrot.slane %v2155_v18, 1  ;;  %v4833_v0 = vld [vmem:[#allocation11 + $0x2b0] ss:$8 sps:$4 sm:$0xff]   ;;  %v4842_v10 = vld [vmem:[#allocation11 + $0x2e0] ss:$8 sps:$4 sm:$0xff]  }
 0x2fe   : > { %v1890_v29 = vor.u32 %v1889_v24, %v1886_v23  ;;  %2658 = vmatprep.subr.bf16.mxu1 %v4883_v1  ;;  %v1869_v23 = vrot.slane %v1867_v15, 3  ;;  %v4838_v1 = vld [vmem:[#allocation11 + $0x2c4] ss:$8 sps:$4 sm:$0xff]   ;;  %v4847_v11 = vld [vmem:[#allocation11 + $0x2f4] ss:$8 sps:$4 sm:$0xff]  }
 0x2ff   : > { %v1872_v24 = vrot.slane %v1870_v16, 4  ;;  %v4886_v18 = vld [vmem:[#allocation13 + $0x1c4] ss:$8 sps:$4 sm:$0xff]  }
 0x300   : > { %v1891_v33 = vsel %vm1035_vm1, %v1882_v27, %v1890_v29  ;;  %2061 = vmatpush1.bf16.msra.mxu0 %v4761_v25  ;;  %v2160_v25 = vshll.u32 %v2106_v17, 16  ;;  %v1864_v27 = vrot.slane %v1862_v21, 4  ;;  %v4802_v29 = vld [vmem:[#allocation11 + $0x204] ss:$8 sps:$4 sm:$0xff]   ;;  %v4887_v21 = vld [vmem:[#allocation13 + $0x1d0] ss:$8 sps:$4 sm:$0xff]  }
 0x301   : > { %2086 = vmatprep.mubr.bf16.mxu0 %v1891_v33  ;;  %2062 = vmatprep.subr.bf16.mxu0 %v4766_v26  ;;  %v1861_v26 = vrot.slane %v1859_v20, 3  ;;  %v1873_v32 = vor.u32 %v1872_v24, %v1869_v23  ;;  %v2158_v33 = vor.u32 %v2157_v62, %v2153_v31  ;;  %v4889_v20 = vld [vmem:[#allocation13 + $0x1d4] ss:$8 sps:$4 sm:$0xff]   ;;  %v4890_v23 = vld [vmem:[#allocation13 + $0x1e0] ss:$8 sps:$4 sm:$0xff]  }
 0x302   : > { %2659 = vmatpush1.bf16.msra.mxu1 %v4881_v43  ;;  %v4841_v43 = vld [vmem:[#allocation11 + $0x2d4] ss:$8 sps:$4 sm:$0xff]   ;;  %v4893_v62 = vld [vmem:[#allocation13 + $0x1f0] ss:$8 sps:$4 sm:$0xff]  }
 0x303   : > { %2660 = vmatprep.subr.bf16.mxu1 %v4886_v18  ;;  %v4895_v24 = vld [vmem:[#allocation13 + $0x1f4] ss:$8 sps:$4 sm:$0xff]  }
 0x304   : > { %2063 = vmatpush1.bf16.msra.mxu0 %v4764_v34  ;;  %v2162_v34 = vrot.slane %v2160_v25, 1  ;;  %v4898_v25 = vld [vmem:[#allocation13 + $0x4] ss:$8 sps:$4 sm:$0xff]   ;;  %v4925_v18 = vld [vmem:[#allocation13 + $0x94] ss:$8 sps:$4 sm:$0xff]  }
 0x305   : > { %2064 = vmatprep.subr.bf16.mxu0 %v4769_v35  ;;  %v1865_v35 = vor.u32 %v1864_v27, %v1861_v26 }
 0x308   : > { %2065 = vmatpush1.bf16.msra.mxu0 %v4767_v38  ;;  %v1874_v38 = vsel %vm1035_vm1, %v1865_v35, %v1873_v32 }
 0x309   : > { %2066 = vmatprep.subr.bf16.mxu0 %v4772_v39  ;;  %v2163_v39 = vsel %vm1318_vm2, %v2158_v33, %v2162_v34 }
 0x30c   : > { %2067 = vmatpush1.bf16.msra.mxu0 %v4770_v42  ;;  %v4806_v42 = vld [vmem:[#allocation11 + $0x220] ss:$8 sps:$4 sm:$0xff]  }
 0x30d   : > { %2068 = vmatprep.subr.bf16.mxu0 %v4775_v44  ;;  %v4811_v44 = vld [vmem:[#allocation11 + $0x234] ss:$8 sps:$4 sm:$0xff]  }
 0x310   : > { %2069 = vmatpush1.bf16.msra.mxu0 %v4773_v47  ;;  %v4812_v47 = vld [vmem:[#allocation11 + $0x240] ss:$8 sps:$4 sm:$0xff]  }
 0x311   : > { %2070 = vmatprep.subr.bf16.mxu0 %v4778_v48  ;;  %v4817_v48 = vld [vmem:[#allocation11 + $0x254] ss:$8 sps:$4 sm:$0xff]  }
 0x314   : > { %2071 = vmatpush1.bf16.msra.mxu0 %v4776_v51  ;;  %v4818_v51 = vld [vmem:[#allocation11 + $0x260] ss:$8 sps:$4 sm:$0xff]  }
 0x315   : > { %2072 = vmatprep.subr.bf16.mxu0 %v4781_v52  ;;  %v4823_v52 = vld [vmem:[#allocation11 + $0x274] ss:$8 sps:$4 sm:$0xff]  }
 0x318   : > { %2073 = vmatpush1.bf16.msra.mxu0 %v4779_v55  ;;  %v4824_v55 = vld [vmem:[#allocation11 + $0x280] ss:$8 sps:$4 sm:$0xff]  }
 0x319   : > { %2074 = vmatprep.subr.bf16.mxu0 %v4784_v56  ;;  %v4829_v56 = vld [vmem:[#allocation11 + $0x294] ss:$8 sps:$4 sm:$0xff]  }
 0x31c   : > { %2075 = vmatpush1.bf16.msra.mxu0 %v4782_v60  ;;  %v4830_v60 = vld [vmem:[#allocation11 + $0x2a0] ss:$8 sps:$4 sm:$0xff]  }
 0x31d   : > { %2076 = vmatprep.subr.bf16.mxu0 %v4787_v63  ;;  %v4835_v63 = vld [vmem:[#allocation11 + $0x2b4] ss:$8 sps:$4 sm:$0xff]  }
 0x320   : > { %2077 = vmatpush1.bf16.msra.mxu0 %v4785_v2  ;;  %v2097_v2 = vld [vmem:[#allocation4 + $0x10] sm:$0xfe] }
 0x321   : > { %2078 = vmatprep.subr.bf16.mxu0 %v4790_v3  ;;  %v4836_v3 = vld [vmem:[#allocation11 + $0x2c0] ss:$8 sps:$4 sm:$0xff]   ;;  %v2103_v4 = vpack.c.bf16 %v5675_v61, %v2097_v2 }
 0x323   : > { %v2143_v9 = vshll.u32 %v2103_v4, 16  ;;  %v2141_v15 = vshrl.u32 %v2103_v4, 16  ;;  %v5000_v4 = vld [vmem:[#allocation14 + $0x48] sm:$0xff]  }
 0x324   : > { %2079 = vmatpush1.bf16.msra.mxu0 %v4788_v5  ;;  %v2101_v5 = vld [vmem:[#allocation4 + $0x30] sm:$0x1] }
 0x325   : > { %2080 = vmatprep.subr.bf16.mxu0 %v4793_v8  ;;  %v2105_v8 = vpack.c.bf16 %v2101_v5, %v2101_v5  ;;  %v5001_v5 = vld [vmem:[#allocation14 + $0x8] sm:$0xff]  }
 0x327   : > { %v2148_v13 = vshll.u32 %v2105_v8, 16 }
 0x328   : > { %2081 = vmatpush1.bf16.msra.mxu0 %v4791_v12  ;;  %v2145_v12 = vrot.slane %v2143_v9, 1 }
 0x329   : > { %2082 = vmatprep.subr.bf16.mxu0 %v4796_v14  ;;  %v4845_v14 = vld [vmem:[#allocation11 + $0x2f0] ss:$8 sps:$4 sm:$0xff]   ;;  %v2150_v17 = vrot.slane %v2148_v13, 1  ;;  %v4916_v13 = vld [vmem:[#allocation13 + $0x64] ss:$8 sps:$4 sm:$0xff]  }
 0x32a   : > { %v2146_v16 = vor.u32 %v2145_v12, %v2141_v15  ;;  %v4911_v12 = vld [vmem:[#allocation13 + $0x50] ss:$8 sps:$4 sm:$0xff]   ;;  %v4919_v15 = vld [vmem:[#allocation13 + $0x74] ss:$8 sps:$4 sm:$0xff]  }
 0x32c   : > { %2083 = vmatpush1.bf16.msra.mxu0 %v4794_v19  ;;  %v2151_v61 = vsel %vm1318_vm2, %v2146_v16, %v2150_v17  ;;  %v4884_v19 = vld [vmem:[#allocation13 + $0x1c0] ss:$8 sps:$4 sm:$0xff]   ;;  %v4917_v16 = vld [vmem:[#allocation13 + $0x70] ss:$8 sps:$4 sm:$0xff]   ;;  %v4922_v17 = vld [vmem:[#allocation13 + $0x84] ss:$8 sps:$4 sm:$0xff]  }
 0x32d   : > { %2084 = vmatprep.subr.bf16.mxu0 %v4799_v22  ;;  %2661 = vmatpush1.bf16.msra.mxu1 %v4884_v19  ;;  %v4892_v22 = vld [vmem:[#allocation13 + $0x1e4] ss:$8 sps:$4 sm:$0xff]   ;;  %v4923_v19 = vld [vmem:[#allocation13 + $0x90] ss:$8 sps:$4 sm:$0xff]  }
 0x32e   : > { %2662 = vmatprep.subr.bf16.mxu1 %v4889_v20  ;;  %v4928_v20 = vld [vmem:[#allocation13 + $0xa4] ss:$8 sps:$4 sm:$0xff]  }
 0x330   : > { %2085 = vmatpush1.bf16.msra.mxu0 %v4797_v57  ;;  %v2373_v57 = vld [vmem:[%s5790_s6] sm:$0x3] }
 0x331   : > { %2326 = vmatprep.subr.bf16.mxu0 %v4802_v29  ;;  %2663 = vmatpush1.bf16.msra.mxu1 %v4887_v21  ;;  %v2378_v26 = vrot.slane %v2373_v57, %v5649_v28  ;;  %v2382_v27 = vrot.slane %v2373_v57, %v5654_v30  ;;  %v4926_v21 = vld [vmem:[#allocation13 + $0xa0] ss:$8 sps:$4 sm:$0xff]  }
 0x332   : > { %2664 = vmatprep.subr.bf16.mxu1 %v4892_v22  ;;  %v4931_v22 = vld [vmem:[#allocation13 + $0xb4] ss:$8 sps:$4 sm:$0xff]  }
 0x333   : > { %2087 = vmatmul.mubr.bf16.vlgmr.msra.gmra.mrb[8].mxu0 %v1874_v38 }
 0x334   : > { %2327 = vmatpush1.bf16.msra.mxu0 %v4800_v36  ;;  %2358 = vmatprep.mubr.bf16.mxu0 %v2163_v39 }
 0x335   : > { %2328 = vmatprep.subr.bf16.mxu0 %v4805_v37  ;;  %2665 = vmatpush1.bf16.msra.mxu1 %v4890_v23  ;;  %v4929_v23 = vld [vmem:[#allocation13 + $0xb0] ss:$8 sps:$4 sm:$0xff]  }
 0x336   : > { %2666 = vmatprep.subr.bf16.mxu1 %v4895_v24  ;;  %v4934_v24 = vld [vmem:[#allocation13 + $0xc4] ss:$8 sps:$4 sm:$0xff]  }
 0x338   : > { %2329 = vmatpush1.bf16.msra.mxu0 %v4803_v40 }
 0x339   : > { %2330 = vmatprep.subr.bf16.mxu0 %v4808_v41  ;;  %2667 = vmatpush1.bf16.msra.mxu1 %v4893_v62 }
 0x33a   : > { %2875 = vmatprep.subr.bf16.mxu1 %v4898_v25  ;;  %v4932_v25 = vld [vmem:[#allocation13 + $0xc0] ss:$8 sps:$4 sm:$0xff]  }
 0x33c   : > { %2331 = vmatpush1.bf16.msra.mxu0 %v4806_v42  ;;  %v2398_v42 = vld [vmem:[#allocation3 + $0x8] sm:$0x80] }
 0x33d   : > { %2332 = vmatprep.subr.bf16.mxu0 %v4811_v44 }
 0x340   : > { %2333 = vmatpush1.bf16.msra.mxu0 %v4809_v45 }
 0x341   : > { %2334 = vmatprep.subr.bf16.mxu0 %v4814_v46  ;;  %v4896_v46 = vld [vmem:[#allocation13] ss:$8 sps:$4 sm:$0xff]  }
 0x344   : > { %2335 = vmatpush1.bf16.msra.mxu0 %v4812_v47  ;;  %v4901_v47 = vld [vmem:[#allocation13 + $0x14] ss:$8 sps:$4 sm:$0xff]  }
 0x345   : > { %2336 = vmatprep.subr.bf16.mxu0 %v4817_v48 }
 0x348   : > { %2337 = vmatpush1.bf16.msra.mxu0 %v4815_v49  ;;  %v4899_v49 = vld [vmem:[#allocation13 + $0x10] ss:$8 sps:$4 sm:$0xff]  }
 0x349   : > { %2338 = vmatprep.subr.bf16.mxu0 %v4820_v50  ;;  %v4904_v50 = vld [vmem:[#allocation13 + $0x24] ss:$8 sps:$4 sm:$0xff]  }
 0x34c   : > { %2339 = vmatpush1.bf16.msra.mxu0 %v4818_v51 }
 0x34d   : > { %2340 = vmatprep.subr.bf16.mxu0 %v4823_v52 }
 0x350   : > { %2341 = vmatpush1.bf16.msra.mxu0 %v4821_v53 }
 0x351   : > { %2342 = vmatprep.subr.bf16.mxu0 %v4826_v54 }
 0x354   : > { %2343 = vmatpush1.bf16.msra.mxu0 %v4824_v55  ;;  %v4902_v55 = vld [vmem:[#allocation13 + $0x20] ss:$8 sps:$4 sm:$0xff]  }
 0x355   : > { %2344 = vmatprep.subr.bf16.mxu0 %v4829_v56  ;;  %v4996_v56 = vld [vmem:[#allocation14 + $0x40] sm:$0xff]  }
 0x358   : > { %2345 = vmatpush1.bf16.msra.mxu0 %v4827_v58  ;;  %v4997_v58 = vld [vmem:[#allocation14] sm:$0xff]  }
 0x359   : > { %2346 = vmatprep.subr.bf16.mxu0 %v4832_v59  ;;  %v4907_v59 = vld [vmem:[#allocation13 + $0x34] ss:$8 sps:$4 sm:$0xff]  }
 0x35c   : > { %2347 = vmatpush1.bf16.msra.mxu0 %v4830_v60 }
 0x35d   : > { %2348 = vmatprep.subr.bf16.mxu0 %v4835_v63 }
 0x360   : > { %2349 = vmatpush1.bf16.msra.mxu0 %v4833_v0 }
 0x361   : > { %2350 = vmatprep.subr.bf16.mxu0 %v4838_v1 }
 0x364   : > { %2351 = vmatpush1.bf16.msra.mxu0 %v4836_v3 }
 0x365   : > { %2352 = vmatprep.subr.bf16.mxu0 %v4841_v43  ;;  %v4905_v43 = vld [vmem:[#allocation13 + $0x30] ss:$8 sps:$4 sm:$0xff]  }
 0x368   : > { %2353 = vmatpush1.bf16.msra.mxu0 %v4839_v6  ;;  %v4910_v6 = vld [vmem:[#allocation13 + $0x44] ss:$8 sps:$4 sm:$0xff]  }
 0x369   : > { %2354 = vmatprep.subr.bf16.mxu0 %v4844_v7 }
 0x36c   : > { %2355 = vmatpush1.bf16.msra.mxu0 %v4842_v10  ;;  %v4908_v10 = vld [vmem:[#allocation13 + $0x40] ss:$8 sps:$4 sm:$0xff]  }
 0x36d   : > { %2356 = vmatprep.subr.bf16.mxu0 %v4847_v11  ;;  %v4913_v11 = vld [vmem:[#allocation13 + $0x54] ss:$8 sps:$4 sm:$0xff]  }
 0x370   : > { %2357 = vmatpush1.bf16.msra.mxu0 %v4845_v14  ;;  %v4914_v14 = vld [vmem:[#allocation13 + $0x60] ss:$8 sps:$4 sm:$0xff]  }
 0x371   : > { %4361 = vmatprep.subr.bf16.mxu0 %v4996_v56 }
 0x373   : > { %2359 = vmatmul.mubr.bf16.vlgmr.msra.gmra.mrb[8].mxu0 %v2151_v61  ;;  %v4920_v61 = vld [vmem:[#allocation13 + $0x80] ss:$8 sps:$4 sm:$0xff]  }
 0x374   : > { %4362 = vmatpush3.bf16.msra.mxu0 %v4997_v58 }
 0x375   : > { %4363 = vmatprep.subr.bf16.mxu0 %v5000_v4  ;;  %v4955_v4 = vld [vmem:[#allocation13 + $0x234] ss:$8 sps:$4 sm:$0xff]  }
 0x378   : > { %4364 = vmatpush3.bf16.msra.mxu0 %v5001_v5  ;;  %v4953_v5 = vld [vmem:[#allocation13 + $0x230] ss:$8 sps:$4 sm:$0xff]  }
 0x446   : > { %v2360_v29 = vpop.f32.mrb[8].mxu0 }
 0x447   : > { %v2385_v31 = vadd.f32 %v2378_v26, %v2360_v29  ;;  %v2362_v32 = vpop.f32.mrb[9].mxu0 }
 0x448   : > { %v2386_v33 = vadd.f32 %v2382_v27, %v2362_v32  ;;  %v2364_v34 = vpop.f32.mrb[10].mxu0 }
 0x449   : > { %v5696_v35 = vmax.f32 %v2385_v31, 0.0  ;;  %v2387_v36 = vadd.f32 %v2378_v26, %v2364_v34  ;;  %v2366_v37 = vpop.f32.mrb[11].mxu0  ;;  %v2397_v26 = vld [vmem:[#allocation3] sm:$0x80]  ;;  %v2923_v34 = vld [vmem:[#allocation3 + $0x38] sm:$0x1] }
 0x44a   : > { %v2390_v38 = vmax.f32 %v2386_v33, 0.0  ;;  %v2388_v39 = vadd.f32 %v2382_v27, %v2366_v37  ;;  %v4937_v27 = vld [vmem:[#allocation13 + $0xd4] ss:$8 sps:$4 sm:$0xff]   ;;  %v4935_v33 = vld [vmem:[#allocation13 + $0xd0] ss:$8 sps:$4 sm:$0xff]  }
 0x44b   : > { %2393 = vst [vmem:[#allocation3 + $0x10] sm:$0xff] %v5696_v35  ;;  %v5699_v40 = vmax.f32 %v2387_v36, 0.0  ;;  %v2403_v32 = vpack.c.bf16 %v5696_v35, %v2397_v26  ;;  %v4940_v36 = vld [vmem:[#allocation13 + $0xe4] ss:$8 sps:$4 sm:$0xff]  }
 0x44c   : > { %2394 = vst [vmem:[#allocation3 + $0x18] sm:$0xff] %v2390_v38  ;;  %v5701_v41 = vmax.f32 %v2388_v39, 0.0  ;;  %v2404_v48 = vpack.c.bf16 %v2390_v38, %v2398_v42  ;;  %v2927_v39 = vpack.c.bf16 %v2923_v34, %v2923_v34  ;;  %v4988_v26 = vld [vmem:[#allocation13 + $0x2e4] ss:$8 sps:$4 sm:$0xff]  }
 0x44d   : > { %2395 = vst [vmem:[#allocation3 + $0x20] sm:$0xff] %v5699_v40  ;;  %v2441_v44 = vpack.c.bf16 %v5699_v40, %v5696_v35  ;;  %v4941_v35 = vld [vmem:[#allocation13 + $0xf0] ss:$8 sps:$4 sm:$0xff]  }
 0x44e   : > { %2396 = vst [vmem:[#allocation3 + $0x28] sm:$0xff] %v5701_v41  ;;  %v2442_v45 = vpack.c.bf16 %v5701_v41, %v2390_v38  ;;  %v2697_v51 = vshrl.u32 %v2404_v48, 16  ;;  %v2700_v52 = vshll.u32 %v2404_v48, 16 }
 0x450   : > { %2668 = vmatprep.mubr.bf16.mxu1 %v2442_v45  ;;  %v2699_v60 = vrot.slane %v2697_v51, 3  ;;  %v2702_v63 = vrot.slane %v2700_v52, 4  ;;  %v2680_v45 = vshrl.u32 %v2403_v32, 16 }
 0x451   : > { %2669 = vmatmul.mubr.bf16.vlgmr.msra.gmra.mrb[4].mxu1 %v2441_v44  ;;  %v4938_v44 = vld [vmem:[#allocation13 + $0xe0] ss:$8 sps:$4 sm:$0xff]  }
 0x452   : > { %2876 = vmatpush1.bf16.msra.mxu1 %v4896_v46  ;;  %v2703_v7 = vor.u32 %v2702_v63, %v2699_v60  ;;  %v2683_v46 = vshll.u32 %v2403_v32, 16  ;;  %v2682_v51 = vrot.slane %v2680_v45, 3  ;;  %v4944_v60 = vld [vmem:[#allocation13 + $0x200] ss:$8 sps:$4 sm:$0xff]   ;;  %v4949_v63 = vld [vmem:[#allocation13 + $0x214] ss:$8 sps:$4 sm:$0xff]  }
 0x453   : > { %2877 = vmatprep.subr.bf16.mxu1 %v4901_v47  ;;  %v2919_v57 = vld [vmem:[#allocation3 + $0x18] sm:$0xfe] }
 0x454   : > { %v2401_v62 = vld [vmem:[#allocation3 + $0x20] sm:$0x7f]  ;;  %v2925_v31 = vpack.c.bf16 %v5701_v41, %v2919_v57  ;;  %v4943_v47 = vld [vmem:[#allocation13 + $0xf4] ss:$8 sps:$4 sm:$0xff]   ;;  %v2685_v52 = vrot.slane %v2683_v46, 4  ;;  %v4995_v46 = vld [vmem:[#allocation14 + $0x88] sm:$0xff]  }
 0x455   : > { %v2402_v53 = vld [vmem:[#allocation3 + $0x28] sm:$0x7f]  ;;  %v2405_v29 = vpack.c.bf16 %v2401_v62, %v2401_v62  ;;  %v4983_v57 = vld [vmem:[#allocation13 + $0x2d0] ss:$8 sps:$4 sm:$0xff]   ;;  %v4991_v32 = vld [vmem:[#allocation13 + $0x2f4] ss:$8 sps:$4 sm:$0xff]  }
 0x456   : > { %2878 = vmatpush1.bf16.msra.mxu1 %v4899_v49  ;;  %v2406_v54 = vpack.c.bf16 %v2402_v53, %v2402_v53  ;;  %v2976_v42 = vshll.u32 %v2925_v31, 16  ;;  %v4946_v53 = vld [vmem:[#allocation13 + $0x204] ss:$8 sps:$4 sm:$0xff]  }
 0x457   : > { %2879 = vmatprep.subr.bf16.mxu1 %v4904_v50  ;;  %v2688_v37 = vshrl.u32 %v2405_v29, 16  ;;  %v2691_v38 = vshll.u32 %v2405_v29, 16  ;;  %v2981_v50 = vshll.u32 %v2927_v39, 16 }
 0x458   : > { %v2705_v0 = vshrl.u32 %v2406_v54, 16  ;;  %v2708_v1 = vshll.u32 %v2406_v54, 16  ;;  %v2978_v41 = vrot.slane %v2976_v42, 1  ;;  %v2974_v54 = vshrl.u32 %v2925_v31, 16  ;;  %v4986_v31 = vld [vmem:[#allocation13 + $0x2e0] ss:$8 sps:$4 sm:$0xff]  }
 0x459   : > { %v2690_v48 = vrot.slane %v2688_v37, 3  ;;  %v2693_v49 = vrot.slane %v2691_v38, 4  ;;  %v2983_v58 = vrot.slane %v2981_v50, 1  ;;  %v4992_v38 = vld [vmem:[#allocation14 + $0xc0] sm:$0xff]  }
 0x45a   : > { %v2707_v2 = vrot.slane %v2705_v0, 3  ;;  %v2710_v3 = vrot.slane %v2708_v1, 4  ;;  %2880 = vmatpush1.bf16.msra.mxu1 %v4902_v55  ;;  %v2979_v56 = vor.u32 %v2978_v41, %v2974_v54  ;;  %v4993_v42 = vld [vmem:[#allocation14 + $0x80] sm:$0xff]   ;;  %v5003_v41 = vld [vmem:[#allocation14 + $0x98] sm:$0xff]   ;;  %v5005_v54 = vld [vmem:[#allocation14 + $0x10] sm:$0xff]  }
 0x45b   : > { %2881 = vmatprep.subr.bf16.mxu1 %v4907_v59  ;;  %v2694_v55 = vor.u32 %v2693_v49, %v2690_v48  ;;  %v2686_v59 = vor.u32 %v2685_v52, %v2682_v51  ;;  %v4999_v48 = vld [vmem:[#allocation14 + $0x90] sm:$0xff]   ;;  %v5002_v49 = vld [vmem:[#allocation14 + $0xd8] sm:$0xff]   ;;  %v5006_v50 = vld [vmem:[#allocation14 + $0xe0] sm:$0xff]  }
 0x45c   : > { %v2711_v8 = vor.u32 %v2710_v3, %v2707_v2  ;;  %v2984_v1 = vsel %vm1318_vm2, %v2979_v56, %v2983_v58  ;;  %v4947_v2 = vld [vmem:[#allocation13 + $0x210] ss:$8 sps:$4 sm:$0xff]   ;;  %v4952_v3 = vld [vmem:[#allocation13 + $0x224] ss:$8 sps:$4 sm:$0xff]  }
 0x45d   : > { %v2695_v0 = vsel %vm1035_vm1, %v2686_v59, %v2694_v55  ;;  %v5010_v51 = vld [vmem:[#allocation14 + $0xe8] sm:$0xff]   ;;  %v5014_v55 = vld [vmem:[#allocation14 + $0xf0] sm:$0xff]   ;;  %v5008_v58 = vld [vmem:[#allocation14 + $0x58] sm:$0xff]  }
 0x45e   : > { %v2712_v9 = vsel %vm1035_vm1, %v2703_v7, %v2711_v8  ;;  %2882 = vmatpush1.bf16.msra.mxu1 %v4905_v43  ;;  %v4950_v43 = vld [vmem:[#allocation13 + $0x220] ss:$8 sps:$4 sm:$0xff]   ;;  %v4961_v8 = vld [vmem:[#allocation13 + $0x254] ss:$8 sps:$4 sm:$0xff]  }
 0x45f   : > { %2907 = vmatprep.mubr.bf16.mxu1 %v2712_v9  ;;  %2883 = vmatprep.subr.bf16.mxu1 %v4910_v6  ;;  %v4958_v6 = vld [vmem:[#allocation13 + $0x244] ss:$8 sps:$4 sm:$0xff]   ;;  %v4956_v7 = vld [vmem:[#allocation13 + $0x240] ss:$8 sps:$4 sm:$0xff]   ;;  %v4959_v9 = vld [vmem:[#allocation13 + $0x250] ss:$8 sps:$4 sm:$0xff]  }
 0x460   : > { %v5011_v52 = vld [vmem:[#allocation14 + $0xa8] sm:$0xff]   ;;  %v5015_v56 = vld [vmem:[#allocation14 + $0xb0] sm:$0xff]   ;;  %v5009_v59 = vld [vmem:[#allocation14 + $0x18] sm:$0xff]  }
 0x462   : > { %2884 = vmatpush1.bf16.msra.mxu1 %v4908_v10  ;;  %v4964_v10 = vld [vmem:[#allocation13 + $0x264] ss:$8 sps:$4 sm:$0xff]  }
 0x463   : > { %2885 = vmatprep.subr.bf16.mxu1 %v4913_v11  ;;  %v4962_v11 = vld [vmem:[#allocation13 + $0x260] ss:$8 sps:$4 sm:$0xff]  }
 0x466   : > { %2886 = vmatpush1.bf16.msra.mxu1 %v4911_v12  ;;  %v4967_v12 = vld [vmem:[#allocation13 + $0x274] ss:$8 sps:$4 sm:$0xff]  }
 0x467   : > { %2887 = vmatprep.subr.bf16.mxu1 %v4916_v13  ;;  %v4965_v13 = vld [vmem:[#allocation13 + $0x270] ss:$8 sps:$4 sm:$0xff]  }
 0x46a   : > { %2888 = vmatpush1.bf16.msra.mxu1 %v4914_v14  ;;  %v4970_v14 = vld [vmem:[#allocation13 + $0x284] ss:$8 sps:$4 sm:$0xff]  }
 0x46b   : > { %2889 = vmatprep.subr.bf16.mxu1 %v4919_v15  ;;  %v4968_v15 = vld [vmem:[#allocation13 + $0x280] ss:$8 sps:$4 sm:$0xff]  }
 0x46e   : > { %2890 = vmatpush1.bf16.msra.mxu1 %v4917_v16  ;;  %v4973_v16 = vld [vmem:[#allocation13 + $0x294] ss:$8 sps:$4 sm:$0xff]  }
 0x46f   : > { %2891 = vmatprep.subr.bf16.mxu1 %v4922_v17  ;;  %v4971_v17 = vld [vmem:[#allocation13 + $0x290] ss:$8 sps:$4 sm:$0xff]  }
 0x472   : > { %2892 = vmatpush1.bf16.msra.mxu1 %v4920_v61  ;;  %v4976_v61 = vld [vmem:[#allocation13 + $0x2a4] ss:$8 sps:$4 sm:$0xff]  }
 0x473   : > { %2893 = vmatprep.subr.bf16.mxu1 %v4925_v18  ;;  %v4974_v18 = vld [vmem:[#allocation13 + $0x2a0] ss:$8 sps:$4 sm:$0xff]  }
 0x476   : > { %2894 = vmatpush1.bf16.msra.mxu1 %v4923_v19  ;;  %v4979_v19 = vld [vmem:[#allocation13 + $0x2b4] ss:$8 sps:$4 sm:$0xff]  }
 0x477   : > { %2895 = vmatprep.subr.bf16.mxu1 %v4928_v20  ;;  %v4977_v20 = vld [vmem:[#allocation13 + $0x2b0] ss:$8 sps:$4 sm:$0xff]  }
 0x47a   : > { %2896 = vmatpush1.bf16.msra.mxu1 %v4926_v21  ;;  %v4982_v21 = vld [vmem:[#allocation13 + $0x2c4] ss:$8 sps:$4 sm:$0xff]  }
 0x47b   : > { %2897 = vmatprep.subr.bf16.mxu1 %v4931_v22  ;;  %v2918_v22 = vld [vmem:[#allocation3 + $0x10] sm:$0xfe] }
 0x47c   : > { %v2924_v62 = vpack.c.bf16 %v5699_v40, %v2918_v22  ;;  %v3219_v22 = vld [vmem:[#allocation4 + $0x8] sm:$0x80] }
 0x47e   : > { %2898 = vmatpush1.bf16.msra.mxu1 %v4929_v23  ;;  %v4980_v23 = vld [vmem:[#allocation13 + $0x2c0] ss:$8 sps:$4 sm:$0xff]   ;;  %v2964_v29 = vshll.u32 %v2924_v62, 16  ;;  %v2962_v37 = vshrl.u32 %v2924_v62, 16  ;;  %v3612_v62 = vld [vmem:[#allocation4 + $0x38] sm:$0x1] }
 0x47f   : > { %2899 = vmatprep.subr.bf16.mxu1 %v4934_v24  ;;  %v4985_v24 = vld [vmem:[#allocation13 + $0x2d4] ss:$8 sps:$4 sm:$0xff]  }
 0x482   : > { %2900 = vmatpush1.bf16.msra.mxu1 %v4932_v25  ;;  %v2922_v25 = vld [vmem:[#allocation3 + $0x30] sm:$0x1] }
 0x483   : > { %2901 = vmatprep.subr.bf16.mxu1 %v4937_v27  ;;  %v2926_v27 = vpack.c.bf16 %v2922_v25, %v2922_v25 }
 0x485   : > { %v2969_v34 = vshll.u32 %v2926_v27, 16  ;;  %v3616_v27 = vpack.c.bf16 %v3612_v62, %v3612_v62 }
 0x486   : > { %2902 = vmatpush1.bf16.msra.mxu1 %v4935_v33  ;;  %v2966_v33 = vrot.slane %v2964_v29, 1 }
 0x487   : > { %2903 = vmatprep.subr.bf16.mxu1 %v4940_v36  ;;  %v4989_v36 = vld [vmem:[#allocation13 + $0x2f0] ss:$8 sps:$4 sm:$0xff]   ;;  %v2971_v40 = vrot.slane %v2969_v34, 1 }
 0x488   : > { %v2967_v39 = vor.u32 %v2966_v33, %v2962_v37 }
 0x48a   : > { %2904 = vmatpush1.bf16.msra.mxu1 %v4938_v44  ;;  %v4994_v44 = vld [vmem:[#allocation14 + $0xc8] sm:$0xff]   ;;  %v2972_v45 = vsel %vm1318_vm2, %v2967_v39, %v2971_v40 }
 0x48b   : > { %2905 = vmatprep.subr.bf16.mxu1 %v4943_v47  ;;  %v4998_v47 = vld [vmem:[#allocation14 + $0xd0] sm:$0xff]  }
 0x48e   : > { %2906 = vmatpush1.bf16.msra.mxu1 %v4941_v35  ;;  %v5007_v35 = vld [vmem:[#allocation14 + $0xa0] sm:$0xff]  }
 0x48f   : > { %3147 = vmatprep.subr.bf16.mxu1 %v4946_v53  ;;  %v5004_v53 = vld [vmem:[#allocation14 + $0x50] sm:$0xff]  }
 0x490   : > { %4365 = vmatprep.subr.bf16.mxu0 %v5004_v53 }
 0x491   : > { %2908 = vmatmul.mubr.bf16.vlgmr.msra.gmra.mrb[4].mxu1 %v2695_v0  ;;  %4366 = vmatpush3.bf16.msra.mxu0 %v5005_v54  ;;  %v5012_v0 = vld [vmem:[#allocation14 + $0x60] sm:$0xff]  }
 0x492   : > { %3148 = vmatpush1.bf16.msra.mxu1 %v4944_v60  ;;  %3179 = vmatprep.mubr.bf16.mxu1 %v2984_v1  ;;  %v5018_v60 = vld [vmem:[#allocation14 + $0xf8] sm:$0xff]   ;;  %v5013_v1 = vld [vmem:[#allocation14 + $0x20] sm:$0xff]  }
 0x493   : > { %3149 = vmatprep.subr.bf16.mxu1 %v4949_v63  ;;  %4367 = vmatprep.subr.bf16.mxu0 %v5008_v58  ;;  %v5019_v63 = vld [vmem:[#allocation14 + $0xb8] sm:$0xff]  }
 0x495   : > { %4368 = vmatpush3.bf16.msra.mxu0 %v5009_v59 }
 0x496   : > { %3150 = vmatpush1.bf16.msra.mxu1 %v4947_v2  ;;  %v5016_v2 = vld [vmem:[#allocation14 + $0x68] sm:$0xff]   ;;  %4369 = vmatprep.subr.bf16.mxu0 %v5012_v0  ;;  %v5025_v0 = vld [vmem:[#allocation14 + $0x100] sm:$0xff]  }
 0x497   : > { %3151 = vmatprep.subr.bf16.mxu1 %v4952_v3  ;;  %v5017_v3 = vld [vmem:[#allocation14 + $0x28] sm:$0xff]  }
 0x499   : > { %4370 = vmatpush3.bf16.msra.mxu0 %v5013_v1 }
 0x49a   : > { %3152 = vmatpush1.bf16.msra.mxu1 %v4950_v43  ;;  %4371 = vmatprep.subr.bf16.mxu0 %v5016_v2  ;;  %v5020_v43 = vld [vmem:[#allocation14 + $0x70] sm:$0xff]   ;;  %v5026_v2 = vld [vmem:[#allocation14 + $0x148] sm:$0xff]  }
 0x49b   : > { %3153 = vmatprep.subr.bf16.mxu1 %v4955_v4  ;;  %v5021_v4 = vld [vmem:[#allocation14 + $0x30] sm:$0xff]  }
 0x49d   : > { %4372 = vmatpush3.bf16.msra.mxu0 %v5017_v3 }
 0x49e   : > { %3154 = vmatpush1.bf16.msra.mxu1 %v4953_v5  ;;  %4373 = vmatprep.subr.bf16.mxu0 %v5020_v43  ;;  %v5022_v5 = vld [vmem:[#allocation14 + $0x78] sm:$0xff]  }
 0x49f   : > { %3155 = vmatprep.subr.bf16.mxu1 %v4958_v6  ;;  %v5023_v6 = vld [vmem:[#allocation14 + $0x38] sm:$0xff]  }
 0x4a1   : > { %4374 = vmatpush3.bf16.msra.mxu0 %v5021_v4  ;;  %v5027_v4 = vld [vmem:[#allocation14 + $0x108] sm:$0xff]  }
 0x4a2   : > { %3156 = vmatpush1.bf16.msra.mxu1 %v4956_v7  ;;  %4375 = vmatprep.subr.bf16.mxu0 %v5022_v5  ;;  %v5024_v7 = vld [vmem:[#allocation14 + $0x140] sm:$0xff]   ;;  %v5028_v5 = vld [vmem:[#allocation14 + $0x150] sm:$0xff]  }
 0x4a3   : > { %3157 = vmatprep.subr.bf16.mxu1 %v4961_v8  ;;  %v3194_v8 = vld [vmem:[%s5822_s16] sm:$0x3]  ;;  %s5214_s16 = sshll.u32 %s5302_s23, 4  ;;  %s5215_s16 = int_to_ptr.vmem [resolvable:$false] %s5214_s16 }
 0x4a4   : > { %s5216_s30 = scalar_lea.vmem %s5215_s16, 512  ;;  %p5217_p13 = scmp.lt.s32.totalorder %s5735_s12, %s5215_s16 }
 0x4a5   : > { %4376 = vmatpush3.bf16.msra.mxu0 %v5023_v6  ;;  %v5029_v6 = vld [vmem:[#allocation14 + $0x110] sm:$0xff]   ;;  %p5218_p0 = scmp.lt.s32.totalorder %s5216_s30, %s5210_s22 }
 0x4a6   : > { %3158 = vmatpush1.bf16.msra.mxu1 %v4959_v9  ;;  %4383 = vmatprep.subr.bf16.mxu0 %v5024_v7  ;;  %v3199_v9 = vrot.slane %v3194_v8, %v5649_v28  ;;  %v5030_v7 = vld [vmem:[#allocation14 + $0x158] sm:$0xff]  }
 0x4a7   : > { %3159 = vmatprep.subr.bf16.mxu1 %v4964_v10  ;;  %v3203_v10 = vrot.slane %v3194_v8, %v5654_v30  ;;  %v5031_v8 = vld [vmem:[#allocation14 + $0x118] sm:$0xff]   ;;  %p5219_p2 = por %p5218_p0, %p5217_p13 }
 0x4a9   : > { %p5220_p8 = pnand %p5219_p2, %p5213_p1 }
 0x4aa   : > { %3160 = vmatpush1.bf16.msra.mxu1 %v4962_v11 }
 0x4ab   : > { %3161 = vmatprep.subr.bf16.mxu1 %v4967_v12 }
 0x4ae   : > { %3162 = vmatpush1.bf16.msra.mxu1 %v4965_v13 }
 0x4af   : > { %3163 = vmatprep.subr.bf16.mxu1 %v4970_v14 }
 0x4b2   : > { %3164 = vmatpush1.bf16.msra.mxu1 %v4968_v15 }
 0x4b3   : > { %3165 = vmatprep.subr.bf16.mxu1 %v4973_v16 }
 0x4b6   : > { %3166 = vmatpush1.bf16.msra.mxu1 %v4971_v17 }
 0x4b7   : > { %3167 = vmatprep.subr.bf16.mxu1 %v4976_v61 }
 0x4ba   : > { %3168 = vmatpush1.bf16.msra.mxu1 %v4974_v18 }
 0x4bb   : > { %3169 = vmatprep.subr.bf16.mxu1 %v4979_v19 }
 0x4be   : > { %3170 = vmatpush1.bf16.msra.mxu1 %v4977_v20 }
 0x4bf   : > { %3171 = vmatprep.subr.bf16.mxu1 %v4982_v21 }
 0x4c2   : > { %3172 = vmatpush1.bf16.msra.mxu1 %v4980_v23  ;;  %v3218_v23 = vld [vmem:[#allocation4] sm:$0x80] }
 0x4c3   : > { %3173 = vmatprep.subr.bf16.mxu1 %v4985_v24 }
 0x4c6   : > { %3174 = vmatpush1.bf16.msra.mxu1 %v4983_v57 }
 0x4c7   : > { %3175 = vmatprep.subr.bf16.mxu1 %v4988_v26 }
 0x4ca   : > { %3176 = vmatpush1.bf16.msra.mxu1 %v4986_v31 }
 0x4cb   : > { %3177 = vmatprep.subr.bf16.mxu1 %v4991_v32 }
 0x4ce   : > { %3178 = vmatpush1.bf16.msra.mxu1 %v4989_v36 }
 0x4cf   : > { %4339 = vmatprep.subr.bf16.mxu1 %v4992_v38 }
 0x4d1   : > { %3180 = vmatmul.mubr.bf16.vlgmr.msra.gmra.mrb[4].mxu1 %v2972_v45  ;;  %v3670_v45 = vshll.u32 %v3616_v27, 16 }
 0x4d2   : > { %4340 = vmatpush3.bf16.msra.mxu1 %v4993_v42 }
 0x4d3   : > { %4341 = vmatprep.subr.bf16.mxu1 %v4994_v44 }
 0x4d6   : > { %4342 = vmatpush3.bf16.msra.mxu1 %v4995_v46 }
 0x4d7   : > { %4343 = vmatprep.subr.bf16.mxu1 %v4998_v47 }
 0x4da   : > { %4344 = vmatpush3.bf16.msra.mxu1 %v4999_v48 }
 0x4db   : > { %4345 = vmatprep.subr.bf16.mxu1 %v5002_v49 }
 0x4de   : > { %4346 = vmatpush3.bf16.msra.mxu1 %v5003_v41 }
 0x4df   : > { %4347 = vmatprep.subr.bf16.mxu1 %v5006_v50 }
 0x4e2   : > { %4348 = vmatpush3.bf16.msra.mxu1 %v5007_v35 }
 0x4e3   : > { %4349 = vmatprep.subr.bf16.mxu1 %v5010_v51 }
 0x4e6   : > { %4350 = vmatpush3.bf16.msra.mxu1 %v5011_v52 }
 0x4e7   : > { %4351 = vmatprep.subr.bf16.mxu1 %v5014_v55 }
 0x4ea   : > { %4352 = vmatpush3.bf16.msra.mxu1 %v5015_v56 }
 0x4eb   : > { %4353 = vmatprep.subr.bf16.mxu1 %v5018_v60  ;;  %v3672_v60 = vrot.slane %v3670_v45, 1 }
 0x4ee   : > { %4354 = vmatpush3.bf16.msra.mxu1 %v5019_v63 }
 0x5a4   : > { %v3181_v11 = vpop.f32.mrb[4].mxu1 }
 0x5a5   : > { %v3206_v12 = vadd.f32 %v3199_v9, %v3181_v11  ;;  %v3183_v13 = vpop.f32.mrb[5].mxu1  ;;  %v5033_v11 = vld [vmem:[#allocation14 + $0x120] sm:$0xff]  }
 0x5a6   : > { %v3207_v14 = vadd.f32 %v3203_v10, %v3183_v13  ;;  %v3185_v15 = vpop.f32.mrb[6].mxu1 }
 0x5a7   : > { %v3210_v16 = vmax.f32 %v3206_v12, 0.0  ;;  %v3208_v17 = vadd.f32 %v3199_v9, %v3185_v15  ;;  %v3187_v61 = vpop.f32.mrb[7].mxu1  ;;  %v5032_v9 = vld [vmem:[#allocation14 + $0x160] sm:$0xff]   ;;  %v5034_v12 = vld [vmem:[#allocation14 + $0x168] sm:$0xff]  }
 0x5a8   : > { %v3211_v18 = vmax.f32 %v3207_v14, 0.0  ;;  %v3209_v19 = vadd.f32 %v3203_v10, %v3187_v61  ;;  %v3611_v14 = vld [vmem:[#allocation4 + $0x30] sm:$0x1]  ;;  %v5035_v15 = vld [vmem:[#allocation14 + $0x128] sm:$0xff]  }
 0x5a9   : > { %3214 = vst [vmem:[#allocation4 + $0x10] sm:$0xff] %v3210_v16  ;;  %v5720_v20 = vmax.f32 %v3208_v17, 0.0  ;;  %v3224_v25 = vpack.c.bf16 %v3210_v16, %v3218_v23  ;;  %v3615_v17 = vpack.c.bf16 %v3611_v14, %v3611_v14 }
 0x5aa   : > { %3215 = vst [vmem:[#allocation4 + $0x18] sm:$0xff] %v3211_v18  ;;  %v3213_v21 = vmax.f32 %v3209_v19, 0.0  ;;  %v3225_v24 = vpack.c.bf16 %v3211_v18, %v3219_v22  ;;  %v5038_v19 = vld [vmem:[#allocation14 + $0x178] sm:$0xff]  }
 0x5ab   : > { %3216 = vst [vmem:[#allocation4 + $0x20] sm:$0xff] %v5720_v20  ;;  %v3262_v28 = vpack.c.bf16 %v5720_v20, %v3210_v16  ;;  %v3435_v36 = vshrl.u32 %v3224_v25, 16  ;;  %v3438_v37 = vshll.u32 %v3224_v25, 16  ;;  %v5036_v16 = vld [vmem:[#allocation14 + $0x170] sm:$0xff]   ;;  %v3658_v22 = vshll.u32 %v3615_v17, 16 }
 0x5ac   : > { %3217 = vst [vmem:[#allocation4 + $0x28] sm:$0xff] %v3213_v21  ;;  %v3263_v30 = vpack.c.bf16 %v3213_v21, %v3211_v18  ;;  %v3452_v57 = vshrl.u32 %v3225_v24, 16  ;;  %v3455_v29 = vshll.u32 %v3225_v24, 16  ;;  %v5037_v18 = vld [vmem:[#allocation14 + $0x130] sm:$0xff]  }
 0x5ad   : > { %v3437_v41 = vrot.slane %v3435_v36, 3  ;;  %v3440_v50 = vrot.slane %v3438_v37, 4  ;;  %v3660_v24 = vrot.slane %v3658_v22, 1 }
 0x5ae   : > { %3425 = vmatprep.mubr.bf16.mxu1 %v3263_v30  ;;  %v3454_v40 = vrot.slane %v3452_v57, 3  ;;  %v3457_v46 = vrot.slane %v3455_v29, 4 }
 0x5af   : > { %3426 = vmatmul.mubr.bf16.vlgmr.msra.gmra.mrb[8].mxu1 %v3262_v28  ;;  %v3441_v63 = vor.u32 %v3440_v50, %v3437_v41  ;;  %v5039_v28 = vld [vmem:[#allocation14 + $0x138] sm:$0xff]  }
 0x5b0   : > { %v3458_v56 = vor.u32 %v3457_v46, %v3454_v40  ;;  %v3607_v10 = vld [vmem:[#allocation4 + $0x10] sm:$0xfe]  ;;  %v4331_v46 = vld [vmem:[%s5823_s8] ss:$0 sm:$0xff] }
 0x5b1   : > { %v3608_v26 = vld [vmem:[#allocation4 + $0x18] sm:$0xfe]  ;;  %v3613_v13 = vpack.c.bf16 %v5720_v20, %v3607_v10 }
 0x5b2   : > { %v3222_v31 = vld [vmem:[#allocation4 + $0x20] sm:$0x7f]  ;;  %v3614_v32 = vpack.c.bf16 %v3213_v21, %v3608_v26 }
 0x5b3   : > { %v3223_v33 = vld [vmem:[#allocation4 + $0x28] sm:$0x7f]  ;;  %v3226_v34 = vpack.c.bf16 %v3222_v31, %v3222_v31  ;;  %v3653_v61 = vshll.u32 %v3613_v13, 16  ;;  %v3651_v30 = vshrl.u32 %v3613_v13, 16 }
 0x5b4   : > { %v3227_v38 = vpack.c.bf16 %v3223_v33, %v3223_v33  ;;  %v3665_v39 = vshll.u32 %v3614_v32, 16  ;;  %v3663_v54 = vshrl.u32 %v3614_v32, 16 }
 0x5b5   : > { %v3443_v42 = vshrl.u32 %v3226_v34, 16  ;;  %v3446_v44 = vshll.u32 %v3226_v34, 16  ;;  %v3655_v21 = vrot.slane %v3653_v61, 1 }
 0x5b6   : > { %v3460_v47 = vshrl.u32 %v3227_v38, 16  ;;  %v3463_v48 = vshll.u32 %v3227_v38, 16  ;;  %v3667_v49 = vrot.slane %v3665_v39, 1 }
 0x5b7   : > { %v3445_v35 = vrot.slane %v3443_v42, 3  ;;  %v3448_v51 = vrot.slane %v3446_v44, 4  ;;  %v3656_v23 = vor.u32 %v3655_v21, %v3651_v30 }
 0x5b8   : > { %v3462_v52 = vrot.slane %v3460_v47, 3  ;;  %v3465_v53 = vrot.slane %v3463_v48, 4  ;;  %v3668_v59 = vor.u32 %v3667_v49, %v3663_v54 }
 0x5b9   : > { %v3449_v55 = vor.u32 %v3448_v51, %v3445_v35  ;;  %v3661_v20 = vsel %vm1318_vm2, %v3656_v23, %v3660_v24 }
 0x5ba   : > { %v3466_v58 = vor.u32 %v3465_v53, %v3462_v52  ;;  %v3673_v43 = vsel %vm1318_vm2, %v3668_v59, %v3672_v60 }
 0x5bb   : > { %v3450_v3 = vsel %vm1035_vm1, %v3441_v63, %v3449_v55 }
 0x5bc   : > { %v3467_v1 = vsel %vm1035_vm1, %v3458_v56, %v3466_v58 }
 0x5bd   : > { %3598 = vmatprep.mubr.bf16.mxu0 %v3467_v1 }
 0x5be   : > { %3599 = vmatmul.mubr.bf16.vlgmr.msra.gmra.mrb[12].mxu0 %v3450_v3 }
 0x5bf   : > { %4384 = vmatpush3.bf16.msra.mxu0 %v5025_v0  ;;  %3804 = vmatprep.mubr.bf16.mxu0 %v3673_v43 }
 0x5c0   : > { %4385 = vmatprep.subr.bf16.mxu0 %v5026_v2 }
 0x5c3   : > { %4386 = vmatpush3.bf16.msra.mxu0 %v5027_v4 }
 0x5c4   : > { %4387 = vmatprep.subr.bf16.mxu0 %v5028_v5 }
 0x5c7   : > { %4388 = vmatpush3.bf16.msra.mxu0 %v5029_v6 }
 0x5c8   : > { %4389 = vmatprep.subr.bf16.mxu0 %v5030_v7 }
 0x5cb   : > { %4390 = vmatpush3.bf16.msra.mxu0 %v5031_v8 }
 0x5cc   : > { %4391 = vmatprep.subr.bf16.mxu0 %v5032_v9 }
 0x5cf   : > { %4392 = vmatpush3.bf16.msra.mxu0 %v5033_v11 }
 0x5d0   : > { %4393 = vmatprep.subr.bf16.mxu0 %v5034_v12 }
 0x5d3   : > { %4394 = vmatpush3.bf16.msra.mxu0 %v5035_v15 }
 0x5d4   : > { %4395 = vmatprep.subr.bf16.mxu0 %v5036_v16 }
 0x5d7   : > { %4396 = vmatpush3.bf16.msra.mxu0 %v5037_v18 }
 0x5d8   : > { %4397 = vmatprep.subr.bf16.mxu0 %v5038_v19 }
 0x5db   : > { %4398 = vmatpush3.bf16.msra.mxu0 %v5039_v28 }
 0x5de   : > { %3805 = vmatmul.mubr.bf16.vlgmr.msra.gmra.mrb[16].mxu0 %v3661_v20 }
 0x682   : > { %v4355_v62 = vpop.f32.mrb[8].mxu1 }
 0x683   : > { %v4356_v25 = vpop.f32.mrb[9].mxu1 }
 0x684   : > { %v4357_v57 = vadd.f32 %v4356_v25, %v4355_v62  ;;  %v4358_v26 = vpop.f32.mrb[10].mxu1 }
 0x685   : > { %v4359_v27 = vpop.f32.mrb[11].mxu1 }
 0x686   : > { %v4360_v29 = vadd.f32 %v4359_v27, %v4358_v26 }
 0x691   : > { %v4377_v31 = vpop.f32.mrb[12].mxu0 }
 0x692   : > { %v4378_v32 = vpop.f32.mrb[13].mxu0 }
 0x693   : > { %v4379_v33 = vadd.f32 %v4378_v32, %v4377_v31  ;;  %v4380_v34 = vpop.f32.mrb[14].mxu0 }
 0x694   : > { %v4381_v36 = vpop.f32.mrb[15].mxu0 }
 0x695   : > { %v3601_v37 = vadd.f32 %v4379_v33, %v4357_v57  ;;  %v4382_v38 = vadd.f32 %v4381_v36, %v4380_v34 }
 0x697   : > { %v3604_v39 = vadd.f32 %v4382_v38, %v4360_v29 }
 0x6b1   : > { %v4399_v40 = vpop.f32.mrb[16].mxu0 }
 0x6b2   : > { %v4400_v42 = vpop.f32.mrb[17].mxu0 }
 0x6b3   : > { %v4401_v44 = vadd.f32 %v4400_v42, %v4399_v40  ;;  %v4402_v45 = vpop.f32.mrb[18].mxu0 }
 0x6b4   : > { %v4403_v47 = vpop.f32.mrb[19].mxu0 }
 0x6b5   : > { %v3813_v48 = vadd.f32 %v4401_v44, %v3601_v37  ;;  %v4404_v49 = vadd.f32 %v4403_v47, %v4402_v45 }
 0x6b7   : > { %v3822_v41 = vadd.f32 %v4331_v46, %v3813_v48  ;;  %v3814_v50 = vadd.f32 %v4404_v49, %v3604_v39 }
 0x6b9   : > { %3824 = vst [vmem:[%s477_s24] sm:$0xff] %v3822_v41  ;;  %v3823_v35 = vadd.f32 %v4331_v46, %v3814_v50 }
 0x6bb   : > { %3825 = vst [vmem:[%s477_s24 + $0x8] sm:$0xff] %v3823_v35 }
 0x6bc   : > { %5223 = shalt.err (!%p5220_p8)
}
 0x6bd   : > { %s5224_s25 = scalar_lea.hbm %s5740_s26, 256  ;;  %s5228_s27 = scalar_lea.hbm %s5824_s15, 512 }
 0x6be   : > { %p5225_p6 = scmp.ne.s32.totalorder %s5740_s26, %s5224_s25  ;;  %p5229_p3 = scmp.lt.u32.totalorder %s5740_s26, %s5824_s15 }
 0x6bf   : > { %p5230_p5 = scmp.lt.u32.totalorder %s5228_s27, %s5224_s25  ;;  %p5232_p7 = scmp.lt.u32.totalorder %s5224_s25, %s5740_s26 }
 0x6c0   : > { %p5226_p10 = pnand %p5225_p6, %p5825_p4 }
 0x6c1   : > { %p5231_p9 = por %p5230_p5, %p5229_p3 }
 0x6c2   : > { %p5227_p11 = pneg %p5226_p10 }
 0x6c3   : > { %p5233_p12 = por %p5232_p7, %p5231_p9 }
 0x6c5   : > { %p5234_p1 = pnand %p5233_p12, %p5227_p11 }
 0x6c7   : > { %5237 = shalt.err (!%p5234_p1)
}
 0x6c8   : > { %s5303_s22 = smov 128   ;;  %s5304_s23 = smov 8  }
 0x6c9   : > { %4459 = dma.vmem_to_hbm [thread:$0]  (%p5825_p4), %s5735_s12, 256, %s5740_s26, %s3827_s1, %s5303_s22, %s5303_s22, %s5304_s23  }
 0x6ca PF: > { %s3855_s16 = sand.u32 1, %s5276_s17   ;;  %p5826_p13 = scmp.ne.s32.totalorder %s5812_s28, 0 }
 0x6cb   : > { %p5827_p0 = scmp.ge.s32.totalorder %s5288_s20, 2  ;;  %s3856_s30 = scalar_lea.sflag [#allocation7], %s3855_s16 }
 0x6cd   : > { %p4482_p2 = pnand %p5827_p0, %p5826_p13 }
 0x6cf   : > { %5271 = dma.done.wait (!%p4482_p2), %s3856_s30, 256  }
 0x6d0   : > { %5273 = vsyncadd (!%p4482_p2), %s3856_s30, 4294967040  ;;  %p27_p8 = scmp.ge.s32.totalorder %s5535_s10, 4   ;;  %s5828_s17 = smov %s5280_s18 }
 0x6d1   : > { %s5829_s18 = smov %s5284_s19  ;;  %s5830_s19 = smov %s5547_s21 }
 0x6d2   : > { %s5831_s20 = smov %s5535_s10  ;;  %29 = sbr.rel (!%p27_p8) target bundleno = 13 (0xd), region = 139 }
 0x6d9   :  { %3861 = vsyncpa [#allocation6], 1 }
 0x6da   :  { %3863 = vsyncpa [#allocation6 + $0x1], 1 }
 0x6db   :  { %3864 = vsyncpa [#allocation9], 1 }
 0x6dc   :  { %3865 = vsyncpa [#allocation12], 1 }
 0x6dd   :  { %3866 = vsyncpa [#allocation15], 1 }
 0x6de   :  { %3867 = vsyncpa [#allocation7], 1 }
 0x6df   :  { %3869 = vsyncpa [#allocation7 + $0x1], 1 }

</bundles_post_ra>
